<compile_context>
chip_gen: v6e
topology: v6e:2x2x1
jax: 0.10.0
libtpu: 0.0.40
codegen_flags: <defaults>
</compile_context>

<pallas_src>
import functools
import math

import jax
import jax.numpy as jnp
from jax import lax
from jax.experimental import pallas as pl
from jax.experimental.pallas import tpu as pltpu


def _round_up(x, m):
    return ((x + m - 1) // m) * m


def _self_attention_kernel(x_ref, wqkv_ref, bqkv_ref, wd_ref, bd_ref,
                           e_ref, et_ref, f_ref, gamma_ref, beta_ref, o_ref,
                           *, num_heads, head_dim, eps, compute_dtype):
    nh, hd = num_heads, head_dim
    H = nh * hd

    x_f32 = x_ref[...].astype(jnp.float32)          # (TB, D) residual kept in f32
    x_c = x_f32.astype(compute_dtype)

    # Fused QKV projection: ONE MXU matmul (K=D, N=3H), bf16 operands, f32 accumulate.
    qkv = jnp.dot(x_c, wqkv_ref[...],
                  preferred_element_type=jnp.float32) + bqkv_ref[...]
    q = qkv[:, 0 * H:1 * H]                          # 1/sqrt(hd) folded into wq/bq on host
    k = qkv[:, 1 * H:2 * H]
    v = qkv[:, 2 * H:3 * H]
    k_c = k.astype(compute_dtype)

    e_blk = e_ref[...]                               # (H, nh)  0/1 head-block indicator
    et_blk = et_ref[...]                             # (nh, H)  its transpose
    f_blk = f_ref[...]                               # (H, hd)  head-block-sum indicator

    # Per-token attention over the nh head blocks (no cross-position attention).
    ctx_parts = []
    for i in range(nh):
        q_i = q[:, i * hd:(i + 1) * hd].astype(compute_dtype)            # (TB, hd)
        q_rep = jnp.concatenate([q_i] * nh, axis=-1)                     # (TB, H)
        t_i = q_rep * k_c                                                # (TB, H) VALU
        # all nh scores of query-head i in one MXU pass (K=H) instead of nh XLU reductions
        s_i = jnp.dot(t_i, e_blk, preferred_element_type=jnp.float32)    # (TB, nh)
        m_i = jnp.max(s_i, axis=-1, keepdims=True)                       # 1 lane-reduce
        e_i = jnp.exp(s_i - m_i)                                         # EUP
        den = jnp.sum(e_i, axis=-1, keepdims=True)                       # 1 lane-reduce
        p_i = e_i * pl.reciprocal(den, approx=True)                      # EUP reciprocal
        # TODO(synk): attn_dropout omitted (inference semantics, identity).
        p_rep = jnp.dot(p_i.astype(compute_dtype), et_blk,
                        preferred_element_type=jnp.float32)              # (TB, H)
        w_i = (p_rep * v).astype(compute_dtype)                          # (TB, H)
        ctx_parts.append(jnp.dot(w_i, f_blk,
                                 preferred_element_type=jnp.float32))    # (TB, hd)
    ctx = jnp.concatenate(ctx_parts, axis=-1)                            # (TB, H)

    # Dense projection: one full-K (K=H) MXU matmul on the full-width ctx.
    h = jnp.dot(ctx.astype(compute_dtype), wd_ref[...],
                preferred_element_type=jnp.float32) + bd_ref[...]
    # TODO(synk): out_dropout omitted (inference semantics, identity).

    # Residual + LayerNorm (eps=1e-12), all in f32.
    y = h + x_f32
    mu = jnp.mean(y, axis=-1, keepdims=True)
    yc = y - mu
    var = jnp.mean(yc * yc, axis=-1, keepdims=True)
    inv_std = lax.rsqrt(var + eps)
    o_ref[...] = (yc * inv_std * gamma_ref[...] + beta_ref[...]).astype(o_ref.dtype)


def self_attention_forward(x, params, *, num_heads, block_rows=256, eps=1e-12,
                           compute_dtype=jnp.bfloat16):
    """x: (B, S, D).  params: wq/wk/wv: (D, H), bq/bk/bv: (H,), wd: (H, H), bd: (H,),
    gamma/beta: (H,).  MXU operands are cast to `compute_dtype` (bf16 by default),
    accumulation and softmax/LayerNorm stay in f32."""
    B, S, D = x.shape
    H = params["wq"].shape[1]
    assert H % num_heads == 0
    assert D == H, "residual connection requires input_size == hidden_size"
    assert H % 128 == 0, "keep hidden lane-dense (multiple of 128) for unmasked stores"
    nh = num_heads
    hd = H // nh
    scale = 1.0 / math.sqrt(hd)

    # Host-side weight prep: fold 1/sqrt(hd) into the query projection, fuse QKV into a
    # single (D, 3H) weight, keep matmul operands in bf16 (halves resident weight VMEM).
    wqkv = jnp.concatenate([params["wq"] * scale, params["wk"], params["wv"]],
                           axis=1).astype(compute_dtype)                     # (D, 3H)
    bqkv = jnp.concatenate([params["bq"] * scale, params["bk"], params["bv"]]
                           ).reshape(1, 3 * H).astype(jnp.float32)
    wd = params["wd"].astype(compute_dtype)
    bd = params["bd"].reshape(1, H).astype(jnp.float32)
    gamma = params["gamma"].reshape(1, H).astype(jnp.float32)
    beta = params["beta"].reshape(1, H).astype(jnp.float32)

    # 0/1 indicator matrices: exact in bf16, turn the per-token head attention into
    # lane-dense MXU matmuls instead of O(nh^2) cross-lane reductions.
    eye_h = jnp.eye(nh, dtype=jnp.float32)
    e_blk = jnp.repeat(eye_h, hd, axis=0).astype(compute_dtype)              # (H, nh)
    et_blk = jnp.repeat(eye_h, hd, axis=1).astype(compute_dtype)             # (nh, H)
    f_blk = jnp.tile(jnp.eye(hd, dtype=jnp.float32), (nh, 1)).astype(compute_dtype)  # (H, hd)

    N = B * S
    xf = x.reshape(N, D).astype(jnp.float32)

    # Row tile: multiple of 8 sublanes; prefer >= 2 grid steps so the "parallel" axis
    # can split across v7x's two TensorCores.
    TB = min(_round_up(max(block_rows, 8), 8), _round_up(N, 8))
    if _round_up(N, TB) // TB < 2 and N > 8:
        TB = _round_up(pl.cdiv(N, 2), 8)
    Np = _round_up(N, TB)
    if Np != N:
        xf = jnp.pad(xf, ((0, Np - N), (0, 0)))

    # Explicit VMEM budget: weights (single-buffered) + 2x double-buffered x/out tiles
    # + intermediates, with 2x headroom; clamped to stay inside v7x's 64 MiB per core.
    csize = jnp.dtype(compute_dtype).itemsize
    weight_bytes = (D * 3 * H + H * H + H * nh + nh * H + H * hd) * csize + 6 * H * 4
    io_bytes = 2 * 2 * (TB * D + TB * H) * 4
    tmp_bytes = 16 * TB * H * 4
    vmem_limit = int(min(max(2 * (weight_bytes + io_bytes + tmp_bytes), 32 * 2**20),
                         64 * 2**20))

    kernel = functools.partial(_self_attention_kernel, num_heads=nh, head_dim=hd,
                               eps=eps, compute_dtype=compute_dtype)

    def build(single_buffer_weights):
        def const_spec(shape):
            idx = lambda i: (0, 0)
            if single_buffer_weights:
                try:
                    # Resident weights: no double-buffering (halves weight VMEM).
                    return pl.BlockSpec(shape, idx, pipeline_mode=pl.Buffered(1))
                except TypeError:
                    pass
            return pl.BlockSpec(shape, idx)

        grid_spec = pltpu.PrefetchScalarGridSpec(
            num_scalar_prefetch=0,
            grid=(Np // TB,),
            in_specs=[
                pl.BlockSpec((TB, D), lambda i: (i, 0)),   # x tile (pipelined)
                const_spec((D, 3 * H)),                    # fused wqkv
                const_spec((1, 3 * H)),                    # fused bqkv
                const_spec((H, H)),                        # wd
                const_spec((1, H)),                        # bd
                const_spec((H, nh)),                       # e_blk
                const_spec((nh, H)),                       # et_blk
                const_spec((H, hd)),                       # f_blk
                const_spec((1, H)),                        # gamma
                const_spec((1, H)),                        # beta
            ],
            out_specs=pl.BlockSpec((TB, H), lambda i: (i, 0)),
        )
        return pl.pallas_call(
            kernel,
            out_shape=jax.ShapeDtypeStruct((Np, H), jnp.float32),
            grid_spec=grid_spec,
            compiler_params=pltpu.CompilerParams(
                dimension_semantics=("parallel",),
                vmem_limit_bytes=vmem_limit,
            ),
        )

    args = (xf, wqkv, bqkv, wd, bd, e_blk, et_blk, f_blk, gamma, beta)
    try:
        out = build(True)(*args)
    except Exception:
        # Pallas versions without pipeline_mode=pl.Buffered(1) support on BlockSpec.
        out = build(False)(*args)

    return out[:N].reshape(B, S, H)


def self_attention_reference(x, params, *, num_heads, eps=1e-12):
    """Plain-JAX mirror of the PyTorch forward (no permute in transpose_for_scores)."""
    B, S, D = x.shape
    H = params["wq"].shape[1]
    hd = H // num_heads
    hi = jax.lax.Precision.HIGHEST
    xf = x.astype(jnp.float32)
    q = jnp.dot(xf, params["wq"], precision=hi) + params["bq"]
    k = jnp.dot(xf, params["wk"], precision=hi) + params["bk"]
    v = jnp.dot(xf, params["wv"], precision=hi) + params["bv"]
    q4 = q.reshape(B, S, num_heads, hd)
    k4 = k.reshape(B, S, num_heads, hd)
    v4 = v.reshape(B, S, num_heads, hd)
    scores = jnp.einsum("bsih,bsjh->bsij", q4, k4, precision=hi) / math.sqrt(hd)
    probs = jax.nn.softmax(scores, axis=-1)
    ctx = jnp.einsum("bsij,bsjh->bsih", probs, v4, precision=hi).reshape(B, S, H)
    h = jnp.dot(ctx, params["wd"], precision=hi) + params["bd"]
    y = h + xf
    mu = jnp.mean(y, axis=-1, keepdims=True)
    var = jnp.mean((y - mu) ** 2, axis=-1, keepdims=True)
    return (y - mu) / jnp.sqrt(var + eps) * params["gamma"] + params["beta"]


def init_params(key, input_size, hidden_size, dtype=jnp.float32):
    """Deterministic init mirroring nn.Linear defaults (uniform +-1/sqrt(fan_in)).
    Weights are returned pre-transposed to (in, out) for the kernel."""
    ks = jax.random.split(key, 10)

    def linear(kw, kb, fan_in, fan_out):
        bound = 1.0 / math.sqrt(fan_in)
        w = jax.random.uniform(kw, (fan_in, fan_out), dtype, -bound, bound)
        b = jax.random.uniform(kb, (fan_out,), dtype, -bound, bound)
        return w, b

    wq, bq = linear(ks[0], ks[1], input_size, hidden_size)
    wk, bk = linear(ks[2], ks[3], input_size, hidden_size)
    wv, bv = linear(ks[4], ks[5], input_size, hidden_size)
    wd, bd = linear(ks[6], ks[7], hidden_size, hidden_size)
    gamma = 1.0 + 0.05 * jax.random.normal(ks[8], (hidden_size,), dtype)
    beta = 0.05 * jax.random.normal(ks[9], (hidden_size,), dtype)
    return dict(wq=wq, bq=bq, wk=wk, bk=bk, wv=wv, bv=bv,
                wd=wd, bd=bd, gamma=gamma, beta=beta)


if __name__ == "__main__":
    # Small but lane-dense demo shapes: hidden = 128 (full lane width), 4 heads of 32.
    B, S = 2, 8
    input_size = hidden_size = 128
    num_heads = 4

    key = jax.random.PRNGKey(0)
    kx, kp = jax.random.split(key)
    x = jax.random.normal(kx, (B, S, input_size), jnp.float32)
    params = init_params(kp, input_size, hidden_size)

    out = self_attention_forward(x, params, num_heads=num_heads)
    out = jax.block_until_ready(out)

    ref = self_attention_reference(x, params, num_heads=num_heads)
    assert out.shape == (B, S, hidden_size)
    max_err = float(jnp.max(jnp.abs(out - ref)))
    # bf16 MXU operands (f32 accumulation) vs a HIGHEST-precision f32 reference:
    # bf16-grade tolerance.
    assert jnp.allclose(out, ref, atol=3e-2, rtol=3e-2), f"max_err={max_err}"

    print("KERNEL_OK")
</pallas_src>

<mosaic_0001>
module attributes {stable_mosaic.version = 11 : i64} {
  func.func @_self_attention_kernel(%arg0: i32, %arg1: memref<8x128xf32, #tpu.memory_space<vmem>>, %arg2: memref<128x384xbf16, #tpu.memory_space<vmem>>, %arg3: memref<1x384xf32, #tpu.memory_space<vmem>>, %arg4: memref<128x128xbf16, #tpu.memory_space<vmem>>, %arg5: memref<1x128xf32, #tpu.memory_space<vmem>>, %arg6: memref<128x4xbf16, #tpu.memory_space<vmem>>, %arg7: memref<4x128xbf16, #tpu.memory_space<vmem>>, %arg8: memref<128x32xbf16, #tpu.memory_space<vmem>>, %arg9: memref<1x128xf32, #tpu.memory_space<vmem>>, %arg10: memref<1x128xf32, #tpu.memory_space<vmem>>, %arg11: memref<8x128xf32, #tpu.memory_space<vmem>>) attributes {dimension_semantics = [#tpu.dimension_semantics<parallel>], iteration_bounds = array<i64: 2>, scalar_prefetch = 0 : i64, scratch_operands = 0 : i64, tpu.core_type = #tpu.core_type<tc>, window_params = [{transform_indices = @transform_0, window_bounds = array<i64: 8, 128>}, {pipeline_mode = #tpu.pipeline_mode<synchronous>, transform_indices = @transform_1, window_bounds = array<i64: 128, 384>}, {pipeline_mode = #tpu.pipeline_mode<synchronous>, transform_indices = @transform_2, window_bounds = array<i64: 1, 384>}, {pipeline_mode = #tpu.pipeline_mode<synchronous>, transform_indices = @transform_3, window_bounds = array<i64: 128, 128>}, {pipeline_mode = #tpu.pipeline_mode<synchronous>, transform_indices = @transform_4, window_bounds = array<i64: 1, 128>}, {pipeline_mode = #tpu.pipeline_mode<synchronous>, transform_indices = @transform_5, window_bounds = array<i64: 128, 4>}, {pipeline_mode = #tpu.pipeline_mode<synchronous>, transform_indices = @transform_6, window_bounds = array<i64: 4, 128>}, {pipeline_mode = #tpu.pipeline_mode<synchronous>, transform_indices = @transform_7, window_bounds = array<i64: 128, 32>}, {pipeline_mode = #tpu.pipeline_mode<synchronous>, transform_indices = @transform_8, window_bounds = array<i64: 1, 128>}, {pipeline_mode = #tpu.pipeline_mode<synchronous>, transform_indices = @transform_9, window_bounds = array<i64: 1, 128>}, {transform_indices = @transform_10, window_bounds = array<i64: 8, 128>}]} {
    %c0 = arith.constant 0 : index
    %c0_0 = arith.constant 0 : index
    %0 = vector.load %arg1[%c0, %c0_0] : memref<8x128xf32, #tpu.memory_space<vmem>>, vector<8x128xf32>
    %1 = arith.truncf %0 : vector<8x128xf32> to vector<8x128xbf16>
    %c0_1 = arith.constant 0 : index
    %c0_2 = arith.constant 0 : index
    %2 = vector.load %arg2[%c0_1, %c0_2] : memref<128x384xbf16, #tpu.memory_space<vmem>>, vector<128x384xbf16>
    %cst = arith.constant dense<0.000000e+00> : vector<8x384xf32>
    %3 = tpu.matmul %1, %2, %cst {dimension_numbers = #tpu.dot_dimension_numbers<[1], [0], [0], [1], [0, 0, 1, 1], [], []>} : vector<8x128xbf16>, vector<128x384xbf16>, vector<8x384xf32> -> vector<8x384xf32>
    %c0_3 = arith.constant 0 : index
    %c0_4 = arith.constant 0 : index
    %4 = vector.load %arg3[%c0_3, %c0_4] : memref<1x384xf32, #tpu.memory_space<vmem>>, vector<1x384xf32>
    %5 = vector.broadcast %4 : vector<1x384xf32> to vector<8x384xf32>
    %6 = arith.addf %3, %5 : vector<8x384xf32>
    %7 = vector.extract_strided_slice %6 {offsets = [0, 0], sizes = [8, 128], strides = [1, 1]} : vector<8x384xf32> to vector<8x128xf32>
    %8 = vector.extract_strided_slice %6 {offsets = [0, 128], sizes = [8, 128], strides = [1, 1]} : vector<8x384xf32> to vector<8x128xf32>
    %9 = vector.extract_strided_slice %6 {offsets = [0, 256], sizes = [8, 128], strides = [1, 1]} : vector<8x384xf32> to vector<8x128xf32>
    %10 = arith.truncf %8 : vector<8x128xf32> to vector<8x128xbf16>
    %c0_5 = arith.constant 0 : index
    %c0_6 = arith.constant 0 : index
    %11 = vector.load %arg6[%c0_5, %c0_6] : memref<128x4xbf16, #tpu.memory_space<vmem>>, vector<128x4xbf16>
    %c0_7 = arith.constant 0 : index
    %c0_8 = arith.constant 0 : index
    %12 = vector.load %arg7[%c0_7, %c0_8] : memref<4x128xbf16, #tpu.memory_space<vmem>>, vector<4x128xbf16>
    %c0_9 = arith.constant 0 : index
    %c0_10 = arith.constant 0 : index
    %13 = vector.load %arg8[%c0_9, %c0_10] : memref<128x32xbf16, #tpu.memory_space<vmem>>, vector<128x32xbf16>
    %14 = vector.extract_strided_slice %7 {offsets = [0, 0], sizes = [8, 32], strides = [1, 1]} : vector<8x128xf32> to vector<8x32xf32>
    %15 = arith.truncf %14 : vector<8x32xf32> to vector<8x32xbf16>
    %16 = tpu.concatenate %15, %15, %15, %15 in 1 : vector<8x32xbf16>, vector<8x32xbf16>, vector<8x32xbf16>, vector<8x32xbf16> -> vector<8x128xbf16>
    %17 = arith.mulf %16, %10 : vector<8x128xbf16>
    %cst_11 = arith.constant dense<0.000000e+00> : vector<8x4xf32>
    %18 = tpu.matmul %17, %11, %cst_11 {dimension_numbers = #tpu.dot_dimension_numbers<[1], [0], [0], [1], [0, 0, 1, 1], [], []>} : vector<8x128xbf16>, vector<128x4xbf16>, vector<8x4xf32> -> vector<8x4xf32>
    %cst_12 = arith.constant dense<0xFF800000> : vector<8xf32>
    %19 = vector.multi_reduction <maximumf>, %18, %cst_12 [1] : vector<8x4xf32> to vector<8xf32>
    %20 = vector.shape_cast %19 : vector<8xf32> to vector<8x1xf32>
    %21 = vector.broadcast %20 : vector<8x1xf32> to vector<8x4xf32>
    %22 = arith.subf %18, %21 : vector<8x4xf32>
    %23 = math.exp %22 : vector<8x4xf32>
    %cst_13 = arith.constant dense<0.000000e+00> : vector<8xf32>
    %24 = vector.multi_reduction <add>, %23, %cst_13 [1] : vector<8x4xf32> to vector<8xf32>
    %25 = vector.shape_cast %24 : vector<8xf32> to vector<8x1xf32>
    %26 = tpu.reciprocal %25 {approx = true} : vector<8x1xf32> -> vector<8x1xf32>
    %27 = vector.broadcast %26 : vector<8x1xf32> to vector<8x4xf32>
    %28 = arith.mulf %23, %27 : vector<8x4xf32>
    %29 = arith.truncf %28 : vector<8x4xf32> to vector<8x4xbf16>
    %cst_14 = arith.constant dense<0.000000e+00> : vector<8x128xf32>
    %30 = tpu.matmul %29, %12, %cst_14 {dimension_numbers = #tpu.dot_dimension_numbers<[1], [0], [0], [1], [0, 0, 1, 1], [], []>} : vector<8x4xbf16>, vector<4x128xbf16>, vector<8x128xf32> -> vector<8x128xf32>
    %31 = arith.mulf %30, %9 : vector<8x128xf32>
    %32 = arith.truncf %31 : vector<8x128xf32> to vector<8x128xbf16>
    %cst_15 = arith.constant dense<0.000000e+00> : vector<8x32xf32>
    %33 = tpu.matmul %32, %13, %cst_15 {dimension_numbers = #tpu.dot_dimension_numbers<[1], [0], [0], [1], [0, 0, 1, 1], [], []>} : vector<8x128xbf16>, vector<128x32xbf16>, vector<8x32xf32> -> vector<8x32xf32>
    %34 = vector.extract_strided_slice %7 {offsets = [0, 32], sizes = [8, 32], strides = [1, 1]} : vector<8x128xf32> to vector<8x32xf32>
    %35 = arith.truncf %34 : vector<8x32xf32> to vector<8x32xbf16>
    %36 = tpu.concatenate %35, %35, %35, %35 in 1 : vector<8x32xbf16>, vector<8x32xbf16>, vector<8x32xbf16>, vector<8x32xbf16> -> vector<8x128xbf16>
    %37 = arith.mulf %36, %10 : vector<8x128xbf16>
    %cst_16 = arith.constant dense<0.000000e+00> : vector<8x4xf32>
    %38 = tpu.matmul %37, %11, %cst_16 {dimension_numbers = #tpu.dot_dimension_numbers<[1], [0], [0], [1], [0, 0, 1, 1], [], []>} : vector<8x128xbf16>, vector<128x4xbf16>, vector<8x4xf32> -> vector<8x4xf32>
    %cst_17 = arith.constant dense<0xFF800000> : vector<8xf32>
    %39 = vector.multi_reduction <maximumf>, %38, %cst_17 [1] : vector<8x4xf32> to vector<8xf32>
    %40 = vector.shape_cast %39 : vector<8xf32> to vector<8x1xf32>
    %41 = vector.broadcast %40 : vector<8x1xf32> to vector<8x4xf32>
    %42 = arith.subf %38, %41 : vector<8x4xf32>
    %43 = math.exp %42 : vector<8x4xf32>
    %cst_18 = arith.constant dense<0.000000e+00> : vector<8xf32>
    %44 = vector.multi_reduction <add>, %43, %cst_18 [1] : vector<8x4xf32> to vector<8xf32>
    %45 = vector.shape_cast %44 : vector<8xf32> to vector<8x1xf32>
    %46 = tpu.reciprocal %45 {approx = true} : vector<8x1xf32> -> vector<8x1xf32>
    %47 = vector.broadcast %46 : vector<8x1xf32> to vector<8x4xf32>
    %48 = arith.mulf %43, %47 : vector<8x4xf32>
    %49 = arith.truncf %48 : vector<8x4xf32> to vector<8x4xbf16>
    %cst_19 = arith.constant dense<0.000000e+00> : vector<8x128xf32>
    %50 = tpu.matmul %49, %12, %cst_19 {dimension_numbers = #tpu.dot_dimension_numbers<[1], [0], [0], [1], [0, 0, 1, 1], [], []>} : vector<8x4xbf16>, vector<4x128xbf16>, vector<8x128xf32> -> vector<8x128xf32>
    %51 = arith.mulf %50, %9 : vector<8x128xf32>
    %52 = arith.truncf %51 : vector<8x128xf32> to vector<8x128xbf16>
    %cst_20 = arith.constant dense<0.000000e+00> : vector<8x32xf32>
    %53 = tpu.matmul %52, %13, %cst_20 {dimension_numbers = #tpu.dot_dimension_numbers<[1], [0], [0], [1], [0, 0, 1, 1], [], []>} : vector<8x128xbf16>, vector<128x32xbf16>, vector<8x32xf32> -> vector<8x32xf32>
    %54 = vector.extract_strided_slice %7 {offsets = [0, 64], sizes = [8, 32], strides = [1, 1]} : vector<8x128xf32> to vector<8x32xf32>
    %55 = arith.truncf %54 : vector<8x32xf32> to vector<8x32xbf16>
    %56 = tpu.concatenate %55, %55, %55, %55 in 1 : vector<8x32xbf16>, vector<8x32xbf16>, vector<8x32xbf16>, vector<8x32xbf16> -> vector<8x128xbf16>
    %57 = arith.mulf %56, %10 : vector<8x128xbf16>
    %cst_21 = arith.constant dense<0.000000e+00> : vector<8x4xf32>
    %58 = tpu.matmul %57, %11, %cst_21 {dimension_numbers = #tpu.dot_dimension_numbers<[1], [0], [0], [1], [0, 0, 1, 1], [], []>} : vector<8x128xbf16>, vector<128x4xbf16>, vector<8x4xf32> -> vector<8x4xf32>
    %cst_22 = arith.constant dense<0xFF800000> : vector<8xf32>
    %59 = vector.multi_reduction <maximumf>, %58, %cst_22 [1] : vector<8x4xf32> to vector<8xf32>
    %60 = vector.shape_cast %59 : vector<8xf32> to vector<8x1xf32>
    %61 = vector.broadcast %60 : vector<8x1xf32> to vector<8x4xf32>
    %62 = arith.subf %58, %61 : vector<8x4xf32>
    %63 = math.exp %62 : vector<8x4xf32>
    %cst_23 = arith.constant dense<0.000000e+00> : vector<8xf32>
    %64 = vector.multi_reduction <add>, %63, %cst_23 [1] : vector<8x4xf32> to vector<8xf32>
    %65 = vector.shape_cast %64 : vector<8xf32> to vector<8x1xf32>
    %66 = tpu.reciprocal %65 {approx = true} : vector<8x1xf32> -> vector<8x1xf32>
    %67 = vector.broadcast %66 : vector<8x1xf32> to vector<8x4xf32>
    %68 = arith.mulf %63, %67 : vector<8x4xf32>
    %69 = arith.truncf %68 : vector<8x4xf32> to vector<8x4xbf16>
    %cst_24 = arith.constant dense<0.000000e+00> : vector<8x128xf32>
    %70 = tpu.matmul %69, %12, %cst_24 {dimension_numbers = #tpu.dot_dimension_numbers<[1], [0], [0], [1], [0, 0, 1, 1], [], []>} : vector<8x4xbf16>, vector<4x128xbf16>, vector<8x128xf32> -> vector<8x128xf32>
    %71 = arith.mulf %70, %9 : vector<8x128xf32>
    %72 = arith.truncf %71 : vector<8x128xf32> to vector<8x128xbf16>
    %cst_25 = arith.constant dense<0.000000e+00> : vector<8x32xf32>
    %73 = tpu.matmul %72, %13, %cst_25 {dimension_numbers = #tpu.dot_dimension_numbers<[1], [0], [0], [1], [0, 0, 1, 1], [], []>} : vector<8x128xbf16>, vector<128x32xbf16>, vector<8x32xf32> -> vector<8x32xf32>
    %74 = vector.extract_strided_slice %7 {offsets = [0, 96], sizes = [8, 32], strides = [1, 1]} : vector<8x128xf32> to vector<8x32xf32>
    %75 = arith.truncf %74 : vector<8x32xf32> to vector<8x32xbf16>
    %76 = tpu.concatenate %75, %75, %75, %75 in 1 : vector<8x32xbf16>, vector<8x32xbf16>, vector<8x32xbf16>, vector<8x32xbf16> -> vector<8x128xbf16>
    %77 = arith.mulf %76, %10 : vector<8x128xbf16>
    %cst_26 = arith.constant dense<0.000000e+00> : vector<8x4xf32>
    %78 = tpu.matmul %77, %11, %cst_26 {dimension_numbers = #tpu.dot_dimension_numbers<[1], [0], [0], [1], [0, 0, 1, 1], [], []>} : vector<8x128xbf16>, vector<128x4xbf16>, vector<8x4xf32> -> vector<8x4xf32>
    %cst_27 = arith.constant dense<0xFF800000> : vector<8xf32>
    %79 = vector.multi_reduction <maximumf>, %78, %cst_27 [1] : vector<8x4xf32> to vector<8xf32>
    %80 = vector.shape_cast %79 : vector<8xf32> to vector<8x1xf32>
    %81 = vector.broadcast %80 : vector<8x1xf32> to vector<8x4xf32>
    %82 = arith.subf %78, %81 : vector<8x4xf32>
    %83 = math.exp %82 : vector<8x4xf32>
    %cst_28 = arith.constant dense<0.000000e+00> : vector<8xf32>
    %84 = vector.multi_reduction <add>, %83, %cst_28 [1] : vector<8x4xf32> to vector<8xf32>
    %85 = vector.shape_cast %84 : vector<8xf32> to vector<8x1xf32>
    %86 = tpu.reciprocal %85 {approx = true} : vector<8x1xf32> -> vector<8x1xf32>
    %87 = vector.broadcast %86 : vector<8x1xf32> to vector<8x4xf32>
    %88 = arith.mulf %83, %87 : vector<8x4xf32>
    %89 = arith.truncf %88 : vector<8x4xf32> to vector<8x4xbf16>
    %cst_29 = arith.constant dense<0.000000e+00> : vector<8x128xf32>
    %90 = tpu.matmul %89, %12, %cst_29 {dimension_numbers = #tpu.dot_dimension_numbers<[1], [0], [0], [1], [0, 0, 1, 1], [], []>} : vector<8x4xbf16>, vector<4x128xbf16>, vector<8x128xf32> -> vector<8x128xf32>
    %91 = arith.mulf %90, %9 : vector<8x128xf32>
    %92 = arith.truncf %91 : vector<8x128xf32> to vector<8x128xbf16>
    %cst_30 = arith.constant dense<0.000000e+00> : vector<8x32xf32>
    %93 = tpu.matmul %92, %13, %cst_30 {dimension_numbers = #tpu.dot_dimension_numbers<[1], [0], [0], [1], [0, 0, 1, 1], [], []>} : vector<8x128xbf16>, vector<128x32xbf16>, vector<8x32xf32> -> vector<8x32xf32>
    %94 = tpu.concatenate %33, %53, %73, %93 in 1 : vector<8x32xf32>, vector<8x32xf32>, vector<8x32xf32>, vector<8x32xf32> -> vector<8x128xf32>
    %95 = arith.truncf %94 : vector<8x128xf32> to vector<8x128xbf16>
    %c0_31 = arith.constant 0 : index
    %c0_32 = arith.constant 0 : index
    %96 = vector.load %arg4[%c0_31, %c0_32] : memref<128x128xbf16, #tpu.memory_space<vmem>>, vector<128x128xbf16>
    %cst_33 = arith.constant dense<0.000000e+00> : vector<8x128xf32>
    %97 = tpu.matmul %95, %96, %cst_33 {dimension_numbers = #tpu.dot_dimension_numbers<[1], [0], [0], [1], [0, 0, 1, 1], [], []>} : vector<8x128xbf16>, vector<128x128xbf16>, vector<8x128xf32> -> vector<8x128xf32>
    %c0_34 = arith.constant 0 : index
    %c0_35 = arith.constant 0 : index
    %98 = vector.load %arg5[%c0_34, %c0_35] : memref<1x128xf32, #tpu.memory_space<vmem>>, vector<1x128xf32>
    %99 = vector.broadcast %98 : vector<1x128xf32> to vector<8x128xf32>
    %100 = arith.addf %97, %99 : vector<8x128xf32>
    %101 = arith.addf %100, %0 : vector<8x128xf32>
    %cst_36 = arith.constant dense<0.000000e+00> : vector<8xf32>
    %102 = vector.multi_reduction <add>, %101, %cst_36 [1] : vector<8x128xf32> to vector<8xf32>
    %103 = vector.shape_cast %102 : vector<8xf32> to vector<8x1xf32>
    %cst_37 = arith.constant 1.280000e+02 : f32
    %104 = vector.broadcast %cst_37 : f32 to vector<8x1xf32>
    %105 = arith.divf %103, %104 : vector<8x1xf32>
    %106 = vector.broadcast %105 : vector<8x1xf32> to vector<8x128xf32>
    %107 = arith.subf %101, %106 : vector<8x128xf32>
    %108 = arith.mulf %107, %107 : vector<8x128xf32>
    %cst_38 = arith.constant dense<0.000000e+00> : vector<8xf32>
    %109 = vector.multi_reduction <add>, %108, %cst_38 [1] : vector<8x128xf32> to vector<8xf32>
    %110 = vector.shape_cast %109 : vector<8xf32> to vector<8x1xf32>
    %cst_39 = arith.constant 1.280000e+02 : f32
    %111 = vector.broadcast %cst_39 : f32 to vector<8x1xf32>
    %112 = arith.divf %110, %111 : vector<8x1xf32>
    %cst_40 = arith.constant 9.99999996E-13 : f32
    %113 = vector.broadcast %cst_40 : f32 to vector<8x1xf32>
    %114 = arith.addf %112, %113 : vector<8x1xf32>
    %115 = math.rsqrt %114 : vector<8x1xf32>
    %116 = vector.broadcast %115 : vector<8x1xf32> to vector<8x128xf32>
    %117 = arith.mulf %107, %116 : vector<8x128xf32>
    %c0_41 = arith.constant 0 : index
    %c0_42 = arith.constant 0 : index
    %118 = vector.load %arg9[%c0_41, %c0_42] : memref<1x128xf32, #tpu.memory_space<vmem>>, vector<1x128xf32>
    %119 = vector.broadcast %118 : vector<1x128xf32> to vector<8x128xf32>
    %120 = arith.mulf %117, %119 : vector<8x128xf32>
    %c0_43 = arith.constant 0 : index
    %c0_44 = arith.constant 0 : index
    %121 = vector.load %arg10[%c0_43, %c0_44] : memref<1x128xf32, #tpu.memory_space<vmem>>, vector<1x128xf32>
    %122 = vector.broadcast %121 : vector<1x128xf32> to vector<8x128xf32>
    %123 = arith.addf %120, %122 : vector<8x128xf32>
    %c0_45 = arith.constant 0 : index
    %c0_46 = arith.constant 0 : index
    %124 = vector.load %arg11[%c0_45, %c0_46] : memref<8x128xf32, #tpu.memory_space<vmem>>, vector<8x128xf32>
    tpu.vector_store %arg11[%c0_45, %c0_46], %123 {strides = array<i32>} : memref<8x128xf32, #tpu.memory_space<vmem>>, vector<8x128xf32>,
    return
  }
  func.func @transform_0(%arg0: i32) -> (i32, i32) {
    %c0_i32 = arith.constant 0 : i32
    %c0_i32_0 = arith.constant 0 : i32
    return %arg0, %c0_i32 : i32, i32
  }
  func.func @transform_1(%arg0: i32) -> (i32, i32) {
    %c0_i32 = arith.constant 0 : i32
    %c0_i32_0 = arith.constant 0 : i32
    %c0_i32_1 = arith.constant 0 : i32
    return %c0_i32, %c0_i32_0 : i32, i32
  }
  func.func @transform_2(%arg0: i32) -> (i32, i32) {
    %c0_i32 = arith.constant 0 : i32
    %c0_i32_0 = arith.constant 0 : i32
    %c0_i32_1 = arith.constant 0 : i32
    return %c0_i32, %c0_i32_0 : i32, i32
  }
  func.func @transform_3(%arg0: i32) -> (i32, i32) {
    %c0_i32 = arith.constant 0 : i32
    %c0_i32_0 = arith.constant 0 : i32
    %c0_i32_1 = arith.constant 0 : i32
    return %c0_i32, %c0_i32_0 : i32, i32
  }
  func.func @transform_4(%arg0: i32) -> (i32, i32) {
    %c0_i32 = arith.constant 0 : i32
    %c0_i32_0 = arith.constant 0 : i32
    %c0_i32_1 = arith.constant 0 : i32
    return %c0_i32, %c0_i32_0 : i32, i32
  }
  func.func @transform_5(%arg0: i32) -> (i32, i32) {
    %c0_i32 = arith.constant 0 : i32
    %c0_i32_0 = arith.constant 0 : i32
    %c0_i32_1 = arith.constant 0 : i32
    return %c0_i32, %c0_i32_0 : i32, i32
  }
  func.func @transform_6(%arg0: i32) -> (i32, i32) {
    %c0_i32 = arith.constant 0 : i32
    %c0_i32_0 = arith.constant 0 : i32
    %c0_i32_1 = arith.constant 0 : i32
    return %c0_i32, %c0_i32_0 : i32, i32
  }
  func.func @transform_7(%arg0: i32) -> (i32, i32) {
    %c0_i32 = arith.constant 0 : i32
    %c0_i32_0 = arith.constant 0 : i32
    %c0_i32_1 = arith.constant 0 : i32
    return %c0_i32, %c0_i32_0 : i32, i32
  }
  func.func @transform_8(%arg0: i32) -> (i32, i32) {
    %c0_i32 = arith.constant 0 : i32
    %c0_i32_0 = arith.constant 0 : i32
    %c0_i32_1 = arith.constant 0 : i32
    return %c0_i32, %c0_i32_0 : i32, i32
  }
  func.func @transform_9(%arg0: i32) -> (i32, i32) {
    %c0_i32 = arith.constant 0 : i32
    %c0_i32_0 = arith.constant 0 : i32
    %c0_i32_1 = arith.constant 0 : i32
    return %c0_i32, %c0_i32_0 : i32, i32
  }
  func.func @transform_10(%arg0: i32) -> (i32, i32) {
    %c0_i32 = arith.constant 0 : i32
    %c0_i32_0 = arith.constant 0 : i32
    return %arg0, %c0_i32 : i32, i32
  }
}

module attributes {stable_mosaic.version = 11 : i64} {
  func.func @_self_attention_kernel(%arg0: i32, %arg1: memref<8x128xf32, #tpu.memory_space<vmem>>, %arg2: memref<128x384xbf16, #tpu.memory_space<vmem>>, %arg3: memref<1x384xf32, #tpu.memory_space<vmem>>, %arg4: memref<128x128xbf16, #tpu.memory_space<vmem>>, %arg5: memref<1x128xf32, #tpu.memory_space<vmem>>, %arg6: memref<128x4xbf16, #tpu.memory_space<vmem>>, %arg7: memref<4x128xbf16, #tpu.memory_space<vmem>>, %arg8: memref<128x32xbf16, #tpu.memory_space<vmem>>, %arg9: memref<1x128xf32, #tpu.memory_space<vmem>>, %arg10: memref<1x128xf32, #tpu.memory_space<vmem>>, %arg11: memref<8x128xf32, #tpu.memory_space<vmem>>) attributes {dimension_semantics = [#tpu.dimension_semantics<parallel>], iteration_bounds = array<i64: 2>, scalar_prefetch = 0 : i64, scratch_operands = 0 : i64, tpu.core_type = #tpu.core_type<tc>, window_params = [{transform_indices = @transform_0, window_bounds = array<i64: 8, 128>}, {pipeline_mode = #tpu.pipeline_mode<synchronous>, transform_indices = @transform_1, window_bounds = array<i64: 128, 384>}, {pipeline_mode = #tpu.pipeline_mode<synchronous>, transform_indices = @transform_2, window_bounds = array<i64: 1, 384>}, {pipeline_mode = #tpu.pipeline_mode<synchronous>, transform_indices = @transform_3, window_bounds = array<i64: 128, 128>}, {pipeline_mode = #tpu.pipeline_mode<synchronous>, transform_indices = @transform_4, window_bounds = array<i64: 1, 128>}, {pipeline_mode = #tpu.pipeline_mode<synchronous>, transform_indices = @transform_5, window_bounds = array<i64: 128, 4>}, {pipeline_mode = #tpu.pipeline_mode<synchronous>, transform_indices = @transform_6, window_bounds = array<i64: 4, 128>}, {pipeline_mode = #tpu.pipeline_mode<synchronous>, transform_indices = @transform_7, window_bounds = array<i64: 128, 32>}, {pipeline_mode = #tpu.pipeline_mode<synchronous>, transform_indices = @transform_8, window_bounds = array<i64: 1, 128>}, {pipeline_mode = #tpu.pipeline_mode<synchronous>, transform_indices = @transform_9, window_bounds = array<i64: 1, 128>}, {transform_indices = @transform_10, window_bounds = array<i64: 8, 128>}]} {
    %c0 = arith.constant 0 : index
    %c0_0 = arith.constant 0 : index
    %0 = vector.load %arg1[%c0, %c0_0] : memref<8x128xf32, #tpu.memory_space<vmem>>, vector<8x128xf32>
    %1 = arith.truncf %0 : vector<8x128xf32> to vector<8x128xbf16>
    %c0_1 = arith.constant 0 : index
    %c0_2 = arith.constant 0 : index
    %2 = vector.load %arg2[%c0_1, %c0_2] : memref<128x384xbf16, #tpu.memory_space<vmem>>, vector<128x384xbf16>
    %cst = arith.constant dense<0.000000e+00> : vector<8x384xf32>
    %3 = tpu.matmul %1, %2, %cst {dimension_numbers = #tpu.dot_dimension_numbers<[1], [0], [0], [1], [0, 0, 1, 1], [], []>} : vector<8x128xbf16>, vector<128x384xbf16>, vector<8x384xf32> -> vector<8x384xf32>
    %c0_3 = arith.constant 0 : index
    %c0_4 = arith.constant 0 : index
    %4 = vector.load %arg3[%c0_3, %c0_4] : memref<1x384xf32, #tpu.memory_space<vmem>>, vector<1x384xf32>
    %5 = vector.broadcast %4 : vector<1x384xf32> to vector<8x384xf32>
    %6 = arith.addf %3, %5 : vector<8x384xf32>
    %7 = vector.extract_strided_slice %6 {offsets = [0, 0], sizes = [8, 128], strides = [1, 1]} : vector<8x384xf32> to vector<8x128xf32>
    %8 = vector.extract_strided_slice %6 {offsets = [0, 128], sizes = [8, 128], strides = [1, 1]} : vector<8x384xf32> to vector<8x128xf32>
    %9 = vector.extract_strided_slice %6 {offsets = [0, 256], sizes = [8, 128], strides = [1, 1]} : vector<8x384xf32> to vector<8x128xf32>
    %10 = arith.truncf %8 : vector<8x128xf32> to vector<8x128xbf16>
    %c0_5 = arith.constant 0 : index
    %c0_6 = arith.constant 0 : index
    %11 = vector.load %arg6[%c0_5, %c0_6] : memref<128x4xbf16, #tpu.memory_space<vmem>>, vector<128x4xbf16>
    %c0_7 = arith.constant 0 : index
    %c0_8 = arith.constant 0 : index
    %12 = vector.load %arg7[%c0_7, %c0_8] : memref<4x128xbf16, #tpu.memory_space<vmem>>, vector<4x128xbf16>
    %c0_9 = arith.constant 0 : index
    %c0_10 = arith.constant 0 : index
    %13 = vector.load %arg8[%c0_9, %c0_10] : memref<128x32xbf16, #tpu.memory_space<vmem>>, vector<128x32xbf16>
    %14 = vector.extract_strided_slice %7 {offsets = [0, 0], sizes = [8, 32], strides = [1, 1]} : vector<8x128xf32> to vector<8x32xf32>
    %15 = arith.truncf %14 : vector<8x32xf32> to vector<8x32xbf16>
    %16 = tpu.concatenate %15, %15, %15, %15 in 1 : vector<8x32xbf16>, vector<8x32xbf16>, vector<8x32xbf16>, vector<8x32xbf16> -> vector<8x128xbf16>
    %17 = arith.mulf %16, %10 : vector<8x128xbf16>
    %cst_11 = arith.constant dense<0.000000e+00> : vector<8x4xf32>
    %18 = tpu.matmul %17, %11, %cst_11 {dimension_numbers = #tpu.dot_dimension_numbers<[1], [0], [0], [1], [0, 0, 1, 1], [], []>} : vector<8x128xbf16>, vector<128x4xbf16>, vector<8x4xf32> -> vector<8x4xf32>
    %cst_12 = arith.constant dense<0xFF800000> : vector<8xf32>
    %19 = vector.multi_reduction <maximumf>, %18, %cst_12 [1] : vector<8x4xf32> to vector<8xf32>
    %20 = vector.shape_cast %19 : vector<8xf32> to vector<8x1xf32>
    %21 = vector.broadcast %20 : vector<8x1xf32> to vector<8x4xf32>
    %22 = arith.subf %18, %21 : vector<8x4xf32>
    %23 = math.exp %22 : vector<8x4xf32>
    %cst_13 = arith.constant dense<0.000000e+00> : vector<8xf32>
    %24 = vector.multi_reduction <add>, %23, %cst_13 [1] : vector<8x4xf32> to vector<8xf32>
    %25 = vector.shape_cast %24 : vector<8xf32> to vector<8x1xf32>
    %26 = tpu.reciprocal %25 {approx = true} : vector<8x1xf32> -> vector<8x1xf32>
    %27 = vector.broadcast %26 : vector<8x1xf32> to vector<8x4xf32>
    %28 = arith.mulf %23, %27 : vector<8x4xf32>
    %29 = arith.truncf %28 : vector<8x4xf32> to vector<8x4xbf16>
    %cst_14 = arith.constant dense<0.000000e+00> : vector<8x128xf32>
    %30 = tpu.matmul %29, %12, %cst_14 {dimension_numbers = #tpu.dot_dimension_numbers<[1], [0], [0], [1], [0, 0, 1, 1], [], []>} : vector<8x4xbf16>, vector<4x128xbf16>, vector<8x128xf32> -> vector<8x128xf32>
    %31 = arith.mulf %30, %9 : vector<8x128xf32>
    %32 = arith.truncf %31 : vector<8x128xf32> to vector<8x128xbf16>
    %cst_15 = arith.constant dense<0.000000e+00> : vector<8x32xf32>
    %33 = tpu.matmul %32, %13, %cst_15 {dimension_numbers = #tpu.dot_dimension_numbers<[1], [0], [0], [1], [0, 0, 1, 1], [], []>} : vector<8x128xbf16>, vector<128x32xbf16>, vector<8x32xf32> -> vector<8x32xf32>
    %34 = vector.extract_strided_slice %7 {offsets = [0, 32], sizes = [8, 32], strides = [1, 1]} : vector<8x128xf32> to vector<8x32xf32>
    %35 = arith.truncf %34 : vector<8x32xf32> to vector<8x32xbf16>
    %36 = tpu.concatenate %35, %35, %35, %35 in 1 : vector<8x32xbf16>, vector<8x32xbf16>, vector<8x32xbf16>, vector<8x32xbf16> -> vector<8x128xbf16>
    %37 = arith.mulf %36, %10 : vector<8x128xbf16>
    %cst_16 = arith.constant dense<0.000000e+00> : vector<8x4xf32>
    %38 = tpu.matmul %37, %11, %cst_16 {dimension_numbers = #tpu.dot_dimension_numbers<[1], [0], [0], [1], [0, 0, 1, 1], [], []>} : vector<8x128xbf16>, vector<128x4xbf16>, vector<8x4xf32> -> vector<8x4xf32>
    %cst_17 = arith.constant dense<0xFF800000> : vector<8xf32>
    %39 = vector.multi_reduction <maximumf>, %38, %cst_17 [1] : vector<8x4xf32> to vector<8xf32>
    %40 = vector.shape_cast %39 : vector<8xf32> to vector<8x1xf32>
    %41 = vector.broadcast %40 : vector<8x1xf32> to vector<8x4xf32>
    %42 = arith.subf %38, %41 : vector<8x4xf32>
    %43 = math.exp %42 : vector<8x4xf32>
    %cst_18 = arith.constant dense<0.000000e+00> : vector<8xf32>
    %44 = vector.multi_reduction <add>, %43, %cst_18 [1] : vector<8x4xf32> to vector<8xf32>
    %45 = vector.shape_cast %44 : vector<8xf32> to vector<8x1xf32>
    %46 = tpu.reciprocal %45 {approx = true} : vector<8x1xf32> -> vector<8x1xf32>
    %47 = vector.broadcast %46 : vector<8x1xf32> to vector<8x4xf32>
    %48 = arith.mulf %43, %47 : vector<8x4xf32>
    %49 = arith.truncf %48 : vector<8x4xf32> to vector<8x4xbf16>
    %cst_19 = arith.constant dense<0.000000e+00> : vector<8x128xf32>
    %50 = tpu.matmul %49, %12, %cst_19 {dimension_numbers = #tpu.dot_dimension_numbers<[1], [0], [0], [1], [0, 0, 1, 1], [], []>} : vector<8x4xbf16>, vector<4x128xbf16>, vector<8x128xf32> -> vector<8x128xf32>
    %51 = arith.mulf %50, %9 : vector<8x128xf32>
    %52 = arith.truncf %51 : vector<8x128xf32> to vector<8x128xbf16>
    %cst_20 = arith.constant dense<0.000000e+00> : vector<8x32xf32>
    %53 = tpu.matmul %52, %13, %cst_20 {dimension_numbers = #tpu.dot_dimension_numbers<[1], [0], [0], [1], [0, 0, 1, 1], [], []>} : vector<8x128xbf16>, vector<128x32xbf16>, vector<8x32xf32> -> vector<8x32xf32>
    %54 = vector.extract_strided_slice %7 {offsets = [0, 64], sizes = [8, 32], strides = [1, 1]} : vector<8x128xf32> to vector<8x32xf32>
    %55 = arith.truncf %54 : vector<8x32xf32> to vector<8x32xbf16>
    %56 = tpu.concatenate %55, %55, %55, %55 in 1 : vector<8x32xbf16>, vector<8x32xbf16>, vector<8x32xbf16>, vector<8x32xbf16> -> vector<8x128xbf16>
    %57 = arith.mulf %56, %10 : vector<8x128xbf16>
    %cst_21 = arith.constant dense<0.000000e+00> : vector<8x4xf32>
    %58 = tpu.matmul %57, %11, %cst_21 {dimension_numbers = #tpu.dot_dimension_numbers<[1], [0], [0], [1], [0, 0, 1, 1], [], []>} : vector<8x128xbf16>, vector<128x4xbf16>, vector<8x4xf32> -> vector<8x4xf32>
    %cst_22 = arith.constant dense<0xFF800000> : vector<8xf32>
    %59 = vector.multi_reduction <maximumf>, %58, %cst_22 [1] : vector<8x4xf32> to vector<8xf32>
    %60 = vector.shape_cast %59 : vector<8xf32> to vector<8x1xf32>
    %61 = vector.broadcast %60 : vector<8x1xf32> to vector<8x4xf32>
    %62 = arith.subf %58, %61 : vector<8x4xf32>
    %63 = math.exp %62 : vector<8x4xf32>
    %cst_23 = arith.constant dense<0.000000e+00> : vector<8xf32>
    %64 = vector.multi_reduction <add>, %63, %cst_23 [1] : vector<8x4xf32> to vector<8xf32>
    %65 = vector.shape_cast %64 : vector<8xf32> to vector<8x1xf32>
    %66 = tpu.reciprocal %65 {approx = true} : vector<8x1xf32> -> vector<8x1xf32>
    %67 = vector.broadcast %66 : vector<8x1xf32> to vector<8x4xf32>
    %68 = arith.mulf %63, %67 : vector<8x4xf32>
    %69 = arith.truncf %68 : vector<8x4xf32> to vector<8x4xbf16>
    %cst_24 = arith.constant dense<0.000000e+00> : vector<8x128xf32>
    %70 = tpu.matmul %69, %12, %cst_24 {dimension_numbers = #tpu.dot_dimension_numbers<[1], [0], [0], [1], [0, 0, 1, 1], [], []>} : vector<8x4xbf16>, vector<4x128xbf16>, vector<8x128xf32> -> vector<8x128xf32>
    %71 = arith.mulf %70, %9 : vector<8x128xf32>
    %72 = arith.truncf %71 : vector<8x128xf32> to vector<8x128xbf16>
    %cst_25 = arith.constant dense<0.000000e+00> : vector<8x32xf32>
    %73 = tpu.matmul %72, %13, %cst_25 {dimension_numbers = #tpu.dot_dimension_numbers<[1], [0], [0], [1], [0, 0, 1, 1], [], []>} : vector<8x128xbf16>, vector<128x32xbf16>, vector<8x32xf32> -> vector<8x32xf32>
    %74 = vector.extract_strided_slice %7 {offsets = [0, 96], sizes = [8, 32], strides = [1, 1]} : vector<8x128xf32> to vector<8x32xf32>
    %75 = arith.truncf %74 : vector<8x32xf32> to vector<8x32xbf16>
    %76 = tpu.concatenate %75, %75, %75, %75 in 1 : vector<8x32xbf16>, vector<8x32xbf16>, vector<8x32xbf16>, vector<8x32xbf16> -> vector<8x128xbf16>
    %77 = arith.mulf %76, %10 : vector<8x128xbf16>
    %cst_26 = arith.constant dense<0.000000e+00> : vector<8x4xf32>
    %78 = tpu.matmul %77, %11, %cst_26 {dimension_numbers = #tpu.dot_dimension_numbers<[1], [0], [0], [1], [0, 0, 1, 1], [], []>} : vector<8x128xbf16>, vector<128x4xbf16>, vector<8x4xf32> -> vector<8x4xf32>
    %cst_27 = arith.constant dense<0xFF800000> : vector<8xf32>
    %79 = vector.multi_reduction <maximumf>, %78, %cst_27 [1] : vector<8x4xf32> to vector<8xf32>
    %80 = vector.shape_cast %79 : vector<8xf32> to vector<8x1xf32>
    %81 = vector.broadcast %80 : vector<8x1xf32> to vector<8x4xf32>
    %82 = arith.subf %78, %81 : vector<8x4xf32>
    %83 = math.exp %82 : vector<8x4xf32>
    %cst_28 = arith.constant dense<0.000000e+00> : vector<8xf32>
    %84 = vector.multi_reduction <add>, %83, %cst_28 [1] : vector<8x4xf32> to vector<8xf32>
    %85 = vector.shape_cast %84 : vector<8xf32> to vector<8x1xf32>
    %86 = tpu.reciprocal %85 {approx = true} : vector<8x1xf32> -> vector<8x1xf32>
    %87 = vector.broadcast %86 : vector<8x1xf32> to vector<8x4xf32>
    %88 = arith.mulf %83, %87 : vector<8x4xf32>
    %89 = arith.truncf %88 : vector<8x4xf32> to vector<8x4xbf16>
    %cst_29 = arith.constant dense<0.000000e+00> : vector<8x128xf32>
    %90 = tpu.matmul %89, %12, %cst_29 {dimension_numbers = #tpu.dot_dimension_numbers<[1], [0], [0], [1], [0, 0, 1, 1], [], []>} : vector<8x4xbf16>, vector<4x128xbf16>, vector<8x128xf32> -> vector<8x128xf32>
    %91 = arith.mulf %90, %9 : vector<8x128xf32>
    %92 = arith.truncf %91 : vector<8x128xf32> to vector<8x128xbf16>
    %cst_30 = arith.constant dense<0.000000e+00> : vector<8x32xf32>
    %93 = tpu.matmul %92, %13, %cst_30 {dimension_numbers = #tpu.dot_dimension_numbers<[1], [0], [0], [1], [0, 0, 1, 1], [], []>} : vector<8x128xbf16>, vector<128x32xbf16>, vector<8x32xf32> -> vector<8x32xf32>
    %94 = tpu.concatenate %33, %53, %73, %93 in 1 : vector<8x32xf32>, vector<8x32xf32>, vector<8x32xf32>, vector<8x32xf32> -> vector<8x128xf32>
    %95 = arith.truncf %94 : vector<8x128xf32> to vector<8x128xbf16>
    %c0_31 = arith.constant 0 : index
    %c0_32 = arith.constant 0 : index
    %96 = vector.load %arg4[%c0_31, %c0_32] : memref<128x128xbf16, #tpu.memory_space<vmem>>, vector<128x128xbf16>
    %cst_33 = arith.constant dense<0.000000e+00> : vector<8x128xf32>
    %97 = tpu.matmul %95, %96, %cst_33 {dimension_numbers = #tpu.dot_dimension_numbers<[1], [0], [0], [1], [0, 0, 1, 1], [], []>} : vector<8x128xbf16>, vector<128x128xbf16>, vector<8x128xf32> -> vector<8x128xf32>
    %c0_34 = arith.constant 0 : index
    %c0_35 = arith.constant 0 : index
    %98 = vector.load %arg5[%c0_34, %c0_35] : memref<1x128xf32, #tpu.memory_space<vmem>>, vector<1x128xf32>
    %99 = vector.broadcast %98 : vector<1x128xf32> to vector<8x128xf32>
    %100 = arith.addf %97, %99 : vector<8x128xf32>
    %101 = arith.addf %100, %0 : vector<8x128xf32>
    %cst_36 = arith.constant dense<0.000000e+00> : vector<8xf32>
    %102 = vector.multi_reduction <add>, %101, %cst_36 [1] : vector<8x128xf32> to vector<8xf32>
    %103 = vector.shape_cast %102 : vector<8xf32> to vector<8x1xf32>
    %cst_37 = arith.constant 1.280000e+02 : f32
    %104 = vector.broadcast %cst_37 : f32 to vector<8x1xf32>
    %105 = arith.divf %103, %104 : vector<8x1xf32>
    %106 = vector.broadcast %105 : vector<8x1xf32> to vector<8x128xf32>
    %107 = arith.subf %101, %106 : vector<8x128xf32>
    %108 = arith.mulf %107, %107 : vector<8x128xf32>
    %cst_38 = arith.constant dense<0.000000e+00> : vector<8xf32>
    %109 = vector.multi_reduction <add>, %108, %cst_38 [1] : vector<8x128xf32> to vector<8xf32>
    %110 = vector.shape_cast %109 : vector<8xf32> to vector<8x1xf32>
    %cst_39 = arith.constant 1.280000e+02 : f32
    %111 = vector.broadcast %cst_39 : f32 to vector<8x1xf32>
    %112 = arith.divf %110, %111 : vector<8x1xf32>
    %cst_40 = arith.constant 9.99999996E-13 : f32
    %113 = vector.broadcast %cst_40 : f32 to vector<8x1xf32>
    %114 = arith.addf %112, %113 : vector<8x1xf32>
    %115 = math.rsqrt %114 : vector<8x1xf32>
    %116 = vector.broadcast %115 : vector<8x1xf32> to vector<8x128xf32>
    %117 = arith.mulf %107, %116 : vector<8x128xf32>
    %c0_41 = arith.constant 0 : index
    %c0_42 = arith.constant 0 : index
    %118 = vector.load %arg9[%c0_41, %c0_42] : memref<1x128xf32, #tpu.memory_space<vmem>>, vector<1x128xf32>
    %119 = vector.broadcast %118 : vector<1x128xf32> to vector<8x128xf32>
    %120 = arith.mulf %117, %119 : vector<8x128xf32>
    %c0_43 = arith.constant 0 : index
    %c0_44 = arith.constant 0 : index
    %121 = vector.load %arg10[%c0_43, %c0_44] : memref<1x128xf32, #tpu.memory_space<vmem>>, vector<1x128xf32>
    %122 = vector.broadcast %121 : vector<1x128xf32> to vector<8x128xf32>
    %123 = arith.addf %120, %122 : vector<8x128xf32>
    %c0_45 = arith.constant 0 : index
    %c0_46 = arith.constant 0 : index
    %124 = vector.load %arg11[%c0_45, %c0_46] : memref<8x128xf32, #tpu.memory_space<vmem>>, vector<8x128xf32>
    tpu.vector_store %arg11[%c0_45, %c0_46], %123 {strides = array<i32>} : memref<8x128xf32, #tpu.memory_space<vmem>>, vector<8x128xf32>,
    return
  }
  func.func @transform_0(%arg0: i32) -> (i32, i32) {
    %c0_i32 = arith.constant 0 : i32
    %c0_i32_0 = arith.constant 0 : i32
    return %arg0, %c0_i32 : i32, i32
  }
  func.func @transform_1(%arg0: i32) -> (i32, i32) {
    %c0_i32 = arith.constant 0 : i32
    %c0_i32_0 = arith.constant 0 : i32
    %c0_i32_1 = arith.constant 0 : i32
    return %c0_i32, %c0_i32_0 : i32, i32
  }
  func.func @transform_2(%arg0: i32) -> (i32, i32) {
    %c0_i32 = arith.constant 0 : i32
    %c0_i32_0 = arith.constant 0 : i32
    %c0_i32_1 = arith.constant 0 : i32
    return %c0_i32, %c0_i32_0 : i32, i32
  }
  func.func @transform_3(%arg0: i32) -> (i32, i32) {
    %c0_i32 = arith.constant 0 : i32
    %c0_i32_0 = arith.constant 0 : i32
    %c0_i32_1 = arith.constant 0 : i32
    return %c0_i32, %c0_i32_0 : i32, i32
  }
  func.func @transform_4(%arg0: i32) -> (i32, i32) {
    %c0_i32 = arith.constant 0 : i32
    %c0_i32_0 = arith.constant 0 : i32
    %c0_i32_1 = arith.constant 0 : i32
    return %c0_i32, %c0_i32_0 : i32, i32
  }
  func.func @transform_5(%arg0: i32) -> (i32, i32) {
    %c0_i32 = arith.constant 0 : i32
    %c0_i32_0 = arith.constant 0 : i32
    %c0_i32_1 = arith.constant 0 : i32
    return %c0_i32, %c0_i32_0 : i32, i32
  }
  func.func @transform_6(%arg0: i32) -> (i32, i32) {
    %c0_i32 = arith.constant 0 : i32
    %c0_i32_0 = arith.constant 0 : i32
    %c0_i32_1 = arith.constant 0 : i32
    return %c0_i32, %c0_i32_0 : i32, i32
  }
  func.func @transform_7(%arg0: i32) -> (i32, i32) {
    %c0_i32 = arith.constant 0 : i32
    %c0_i32_0 = arith.constant 0 : i32
    %c0_i32_1 = arith.constant 0 : i32
    return %c0_i32, %c0_i32_0 : i32, i32
  }
  func.func @transform_8(%arg0: i32) -> (i32, i32) {
    %c0_i32 = arith.constant 0 : i32
    %c0_i32_0 = arith.constant 0 : i32
    %c0_i32_1 = arith.constant 0 : i32
    return %c0_i32, %c0_i32_0 : i32, i32
  }
  func.func @transform_9(%arg0: i32) -> (i32, i32) {
    %c0_i32 = arith.constant 0 : i32
    %c0_i32_0 = arith.constant 0 : i32
    %c0_i32_1 = arith.constant 0 : i32
    return %c0_i32, %c0_i32_0 : i32, i32
  }
  func.func @transform_10(%arg0: i32) -> (i32, i32) {
    %c0_i32 = arith.constant 0 : i32
    %c0_i32_0 = arith.constant 0 : i32
    return %arg0, %c0_i32 : i32, i32
  }
}

</mosaic_0001>

<bundles_post_ra>
// kernel: tpu_custom_call.1
= control target key start
LH: loop header
LB: loop body
LE: loop exit
PB: predicated region body
PF: predicated region fallthrough
CT: control target
= control target key end

     0   :  { %s2754_s0 = inlined_call_operand.vmem [shape: f32[16,128], index: 0, kind: input, shape index: {}]   ;;  %s2755_s1 = inlined_call_operand.hbm [shape: bf16[128,384], index: 1, kind: input, shape index: {}]   ;;  %s2756_s2 = inlined_call_operand.vmem [shape: f32[1,384], index: 2, kind: input, shape index: {}]   ;;  %s2757_s3 = inlined_call_operand.vmem [shape: bf16[128,128], index: 3, kind: input, shape index: {}]   ;;  %s2758_s4 = inlined_call_operand.vmem [shape: f32[1,128], index: 4, kind: input, shape index: {}]   ;;  %s2759_s5 = inlined_call_operand.vmem [shape: bf16[128,4], index: 5, kind: input, shape index: {}]   ;;  %s2760_s6 = inlined_call_operand.vmem [shape: bf16[4,128], index: 6, kind: input, shape index: {}]   ;;  %s2761_s7 = inlined_call_operand.vmem [shape: bf16[128,32], index: 7, kind: input, shape index: {}]   ;;  %s2762_s8 = inlined_call_operand.vmem [shape: f32[1,128], index: 8, kind: input, shape index: {}]   ;;  %s2763_s9 = inlined_call_operand.vmem [shape: f32[1,128], index: 9, kind: input, shape index: {}]   ;;  %s2764_s10 = inlined_call_operand.hbm [shape: f32[16,128], index: 10, kind: output, shape index: {}]  }
   0x1   :  { %2765 = sst [smem:[#allocation8_spill]] %s2754_s0 }
   0x2   :  { %2766 = sst [smem:[#allocation9_spill]] %s2755_s1 }
   0x3   :  { %2767 = sst [smem:[#allocation10_spill]] %s2756_s2 }
   0x4   :  { %15 = vsyncpa [#allocation3], 0 }
   0x5   :  { %16 = vsyncpa [#allocation4], 0 }
   0x6   :  { %18 = vsyncpa [#allocation4 + $0x1], 0  ;;  %s2269_s13 = smov 0   ;;  %s2271_s14 = smov 0  }
   0x7   :  { %s2273_s15 = smov 0   ;;  %s2275_s16 = smov 0  }
   0x8 LB: > { %s2290_s17 = sadd.s32 4294967295, %s2202_s16   ;;  %s1591_s18 = sadd.s32 4294967294, %s2202_s16   ;;  %s2202_s16 = sphi %s2275_s16, %s2778_s16   ;;  %s2198_s15 = sphi %s2273_s15, %s2777_s15   ;;  %s2194_s14 = sphi %s2271_s14, %s2776_s14   ;;  %s2190_s13 = sphi %s2269_s13, %s2775_s13  }
   0x9   : > { %s2294_s19 = sadd.s32 1, %s2202_s16   ;;  %s246_s20 = sadd.s32 1, %s2198_s15 }
   0xa   : > { %s243_s21 = ssub.s32 %s2202_s16, %s2294_s19  ;;  %p256_p0 = scmp.ne.s32.totalorder %s2198_s15, %s2194_s14 }
   0xb   : > { %p244_p1 = scmp.eq.s32.totalorder %s243_s21, 0  ;;  %p257_p2 = scmp.eq.s32.totalorder %s2290_s17, 1 }
   0xc   : > { %p262_p3 = scmp.ne.s32.totalorder %s2194_s14, %s2190_s13  ;;  %p263_p4 = scmp.eq.s32.totalorder %s1591_s18, 1 }
   0xd   : > { %s2305_s22 = scalar_select %p244_p1, %s2198_s15, %s246_s20  }
   0xe   : > { %p2307_p5 = por %p257_p2, %p256_p0  ;;  %p2311_p6 = por %p263_p4, %p262_p3 }
   0xf   : > { %p1592_p7 = scmp.ge.s32.totalorder %s2202_s16, 1  ;;  %p270_p8 = scmp.lt.s32.totalorder %s2202_s16, 3 }
  0x10   : > { %s2769_s24 = scalar_select %p2311_p6, 1, 0 }
  0x11   : > { %p1994_p9 = scmp.eq.s32.totalorder %s2290_s17, 0  ;;  %p2318_p10 = pnand %p1592_p7, %p270_p8 }
  0x12   : > { %s2204_s26 = smov [#allocation2]  }
  0x13   : > { %s282_s27 = sshll.u32 %s2204_s26, 4  ;;  %p1986_p11 = pneg %p2318_p10  ;;  %s283_s27 = int_to_ptr.vmem [resolvable:$true] %s282_s27 }
  0x14   : > { %s2123_s28 = scalar_lea.vmem %s283_s27, 3072  ;;  %p2131_p3 = scmp.lt.s32.totalorder %s283_s27, %s283_s27 }
  0x15   : > { %p1987_p12 = pnand %p1994_p9, %p1986_p11  ;;  %p2124_p0 = scmp.ne.s32.totalorder %s283_s27, %s2123_s28 }
  0x16   : > { %p2132_p4 = scmp.lt.s32.totalorder %s2123_s28, %s2123_s28 }
  0x17   : > { %p2114_p13 = pneg %p1987_p12 }
  0x18   : > { %p2133_p6 = por %p2132_p4, %p2131_p3 }
  0x19   : > { %p2126_p1 = pnand %p2124_p0, %p2114_p13 }
  0x1b   : > { %p2127_p2 = pneg %p2126_p1 }
  0x1d   : > { %p2134_p7 = pnand %p2133_p6, %p2127_p2 }
  0x1f   : > { %2137 = shalt.err (!%p2134_p7)
}
  0x20   : > { %s2205_s29 = smov 192   ;;  %s2206_s30 = smov 12  }
  0x21   : > { %s2771_s1 = sld [smem:[#allocation9_spill]] }
  0x23   : > { %329 = sbr.rel (%p2318_p10) target bundleno = 2540 (0x9ec), region = 60 }
  0x27   : > { %1989 = dma.hbm_to_vmem [thread:$0]  (!%p1987_p12), %s2771_s1, 3072, %s283_s27, [#allocation3], %s2205_s29, %s2205_s29, %s2206_s30  }
  0x28   : > { %2181 = dma.done.wait (%p1994_p9), [#allocation3], 3072  }
  0x29   : > { %2183 = vsyncadd (%p1994_p9), [#allocation3], 4294964224  ;;  %v2207_v0 = vmov 0   ;;  %v2038_v1 = vld [vmem:[#allocation2 + $0xac] ss:$12 sps:$4 sm:$0xff]   ;;  %p366_p6 = scmp.lt.s32.totalorder %s2290_s17, 1  ;;  %v407_v26 = vlaneseq }
  0x2a   : > { %582 = vmatprep.mubr.bf16.mxu0 %v2207_v0  ;;  %v2040_v2 = vld [vmem:[#allocation2 + $0xa8] ss:$12 sps:$4 sm:$0xff]   ;;  %550 = vmatprep.subr.bf16.mxu0 %v2038_v1  ;;  %v2043_v4 = vld [vmem:[#allocation2 + $0x90] ss:$12 sps:$4 sm:$0xff]   ;;  %v2046_v6 = vld [vmem:[#allocation2 + $0x78] ss:$12 sps:$4 sm:$0xff]  }
  0x2b   : > { %v2041_v3 = vld [vmem:[#allocation2 + $0x94] ss:$12 sps:$4 sm:$0xff]   ;;  %551 = vmatpush1.bf16.msra.mxu0 %v2040_v2  ;;  %v2044_v5 = vld [vmem:[#allocation2 + $0x7c] ss:$12 sps:$4 sm:$0xff]   ;;  %s367_s18 = scalar_select %p366_p6, %s2290_s17, 1  ;;  %v2208_v20 = vmov 0.0  }
  0x2c   : > { %552 = vmatprep.subr.bf16.mxu0 %v2041_v3  ;;  %v2047_v7 = vld [vmem:[#allocation2 + $0x64] ss:$12 sps:$4 sm:$0xff]   ;;  %v2049_v8 = vld [vmem:[#allocation2 + $0x60] ss:$12 sps:$4 sm:$0xff]   ;;  %v2052_v10 = vld [vmem:[#allocation2 + $0x48] ss:$12 sps:$4 sm:$0xff]   ;;  %1756 = vmatprep.subr.bf16.mxu1 %v2208_v20 }
  0x2d   : > { %s1598_s20 = sshll.u32 %s367_s18, 3  ;;  %v2050_v9 = vld [vmem:[#allocation2 + $0x4c] ss:$12 sps:$4 sm:$0xff]   ;;  %v2053_v11 = vld [vmem:[#allocation2 + $0x34] ss:$12 sps:$4 sm:$0xff]   ;;  %s2772_s0 = sld [smem:[#allocation8_spill]] }
  0x2e   : > { %v2055_v12 = vld [vmem:[#allocation2 + $0x30] ss:$12 sps:$4 sm:$0xff]   ;;  %v2058_v14 = vld [vmem:[#allocation2 + $0x18] ss:$12 sps:$4 sm:$0xff]   ;;  %v2061_v16 = vld [vmem:[#allocation2] ss:$12 sps:$4 sm:$0xff]  }
  0x2f   : > { %553 = vmatpush1.bf16.msra.mxu0 %v2043_v4  ;;  %v2056_v13 = vld [vmem:[#allocation2 + $0x1c] ss:$12 sps:$4 sm:$0xff]   ;;  %v2059_v15 = vld [vmem:[#allocation2 + $0x4] ss:$12 sps:$4 sm:$0xff]   ;;  %v2391_v27 = vshrl.u32 %v407_v26, 7  ;;  %s2773_s2 = sld [smem:[#allocation10_spill]] }
  0x30   : > { %554 = vmatprep.subr.bf16.mxu0 %v2044_v5  ;;  %v2350_v19 = vld [vmem:[%s2759_s5 + $0x38] sm:$0xff]   ;;  %v2358_v21 = vld [vmem:[%s2759_s5 + $0x30] sm:$0xff]   ;;  %v2365_v22 = vld [vmem:[%s2759_s5 + $0x28] sm:$0xff]   ;;  %vm2209_vm0 = vmmov 0   ;;  %s2211_s21 = smov 32   ;;  %s2212_s25 = smov 64  }
  0x31   : > { %v2372_v23 = vld [vmem:[%s2759_s5 + $0x20] sm:$0xff]   ;;  %v2379_v24 = vld [vmem:[%s2759_s5 + $0x18] sm:$0xff]   ;;  %v2386_v25 = vld [vmem:[%s2759_s5 + $0x10] sm:$0xff]   ;;  %v409_v29 = vsub.s32 0, %v2391_v27  ;;  %1772 = vmatprep.mubr.msk.bf16.mxu1 %vm2209_vm0, %v2208_v20  ;;  %v413_v39 = vsub.s32 1, %v2391_v27  ;;  %vm673_vm1 = vcmask 261120  }
  0x32   : > { %v2396_v28 = vld [vmem:[%s2759_s5 + $0x8] sm:$0xff]   ;;  %v2409_v31 = vld [vmem:[%s2759_s5] sm:$0xff]   ;;  %vm680_vm2 = vcmask 785408   ;;  %vm677_vm3 = vcmask 523264   ;;  %vm773_vm4 = vcmask 31744   ;;  %vm789_vm5 = vcmask 1041408  }
  0x33   : > { %555 = vmatpush1.bf16.msra.mxu0 %v2046_v6  ;;  %s369_s26 = scalar_lea.vmem %s2772_s0, %s1598_s20  ;;  %s2210_s20 = smov 96  }
  0x34   : > { %556 = vmatprep.subr.bf16.mxu0 %v2047_v7  ;;  %v2340_v17 = vld [vmem:[%s369_s26] sm:$0xff]  ;;  %v2070_v7 = vld [vmem:[#allocation2 + $0xb0] ss:$12 sps:$4 sm:$0xff]   ;;  %s1655_s30 = sshll.u32 %s2290_s17, 7  ;;  %s2213_s27 = smov [#allocation5]  }
  0x35   : > { %v2344_v18 = vpack.c.bf16 %v2340_v17, %v2340_v17  ;;  %v2404_v30 = vld [vmem:[%s2773_s2] sm:$0x7]  ;;  %1757 = vmatpush3.bf16.msra.mxu1 %v2070_v7  ;;  %s1518_s0 = scalar_lea.hbm %s2764_s10, %s1655_s30 }
  0x36   : > { %v410_v32 = vrot.slane %v2404_v30, %v409_v29  ;;  %v414_v40 = vrot.slane %v2404_v30, %v413_v39  ;;  %1758 = vmatprep.subr.bf16.mxu1 %v2208_v20 }
  0x37   : > { %557 = vmatpush1.bf16.msra.mxu0 %v2049_v8  ;;  %v2071_v8 = vld [vmem:[#allocation2 + $0x98] ss:$12 sps:$4 sm:$0xff]  }
  0x38   : > { %558 = vmatprep.subr.bf16.mxu0 %v2050_v9  ;;  %v2072_v9 = vld [vmem:[#allocation2 + $0x80] ss:$12 sps:$4 sm:$0xff]  }
  0x39   : > { %1759 = vmatpush3.bf16.msra.mxu1 %v2071_v8 }
  0x3a   : > { %1760 = vmatprep.subr.bf16.mxu1 %v2208_v20 }
  0x3b   : > { %559 = vmatpush1.bf16.msra.mxu0 %v2052_v10  ;;  %v2073_v10 = vld [vmem:[#allocation2 + $0x68] ss:$12 sps:$4 sm:$0xff]  }
  0x3c   : > { %560 = vmatprep.subr.bf16.mxu0 %v2053_v11  ;;  %v2074_v11 = vld [vmem:[#allocation2 + $0x50] ss:$12 sps:$4 sm:$0xff]  }
  0x3d   : > { %1761 = vmatpush3.bf16.msra.mxu1 %v2072_v9 }
  0x3e   : > { %1762 = vmatprep.subr.bf16.mxu1 %v2208_v20 }
  0x3f   : > { %561 = vmatpush1.bf16.msra.mxu0 %v2055_v12  ;;  %v2075_v12 = vld [vmem:[#allocation2 + $0x38] ss:$12 sps:$4 sm:$0xff]  }
  0x40   : > { %562 = vmatprep.subr.bf16.mxu0 %v2056_v13 }
  0x41   : > { %1763 = vmatpush3.bf16.msra.mxu1 %v2073_v10 }
  0x42   : > { %1764 = vmatprep.subr.bf16.mxu1 %v2208_v20 }
  0x43   : > { %563 = vmatpush1.bf16.msra.mxu0 %v2058_v14  ;;  %v2076_v14 = vld [vmem:[#allocation2 + $0x20] ss:$12 sps:$4 sm:$0xff]  }
  0x44   : > { %564 = vmatprep.subr.bf16.mxu0 %v2059_v15 }
  0x45   : > { %1765 = vmatpush3.bf16.msra.mxu1 %v2074_v11 }
  0x46   : > { %1766 = vmatprep.subr.bf16.mxu1 %v2208_v20 }
  0x47   : > { %565 = vmatpush1.bf16.msra.mxu0 %v2061_v16 }
  0x48   : > { %1776 = vmatprep.subr.bf16.mxu0 %v2208_v20 }
  0x49   : > { %1767 = vmatpush3.bf16.msra.mxu1 %v2075_v12 }
  0x4a   : > { %583 = vmatmul.mubr.bf16.vlgmr.msra.gmra.mxu0 %v2344_v18  ;;  %1768 = vmatprep.subr.bf16.mxu1 %v2208_v20 }
  0x4b   : > { %1777 = vmatpush3.bf16.msra.mxu0 %v2350_v19  ;;  %1792 = vmatprep.mubr.msk.bf16.mxu0 %vm2209_vm0, %v2208_v20 }
  0x4c   : > { %1778 = vmatprep.subr.bf16.mxu0 %v2208_v20 }
  0x4d   : > { %1769 = vmatpush3.bf16.msra.mxu1 %v2076_v14 }
  0x4e   : > { %1770 = vmatprep.subr.bf16.mxu1 %v2208_v20 }
  0x4f   : > { %1779 = vmatpush3.bf16.msra.mxu0 %v2358_v21 }
  0x50   : > { %1780 = vmatprep.subr.bf16.mxu0 %v2208_v20 }
  0x53   : > { %1781 = vmatpush3.bf16.msra.mxu0 %v2365_v22 }
  0x54   : > { %1782 = vmatprep.subr.bf16.mxu0 %v2208_v20 }
  0x57   : > { %1783 = vmatpush3.bf16.msra.mxu0 %v2372_v23 }
  0x58   : > { %1784 = vmatprep.subr.bf16.mxu0 %v2208_v20 }
  0x5b   : > { %1785 = vmatpush3.bf16.msra.mxu0 %v2379_v24 }
  0x5c   : > { %1786 = vmatprep.subr.bf16.mxu0 %v2208_v20 }
  0x5f   : > { %1787 = vmatpush3.bf16.msra.mxu0 %v2386_v25 }
  0x60   : > { %1788 = vmatprep.subr.bf16.mxu0 %v2208_v20 }
  0x63   : > { %1789 = vmatpush3.bf16.msra.mxu0 %v2396_v28 }
  0x64   : > { %1790 = vmatprep.subr.bf16.mxu0 %v2208_v20 }
  0x67   : > { %1791 = vmatpush3.bf16.msra.mxu0 %v2409_v31 }
  0x68   : > { %1822 = vmatprep.subr.bf16.mxu0 %v2208_v20 }
 0x10a   : > { %v584_v33 = vpop.f32.mrf.mxu0 }
 0x10b   : > { %v585_v34 = vadd.f32 %v584_v33, %v410_v32 }
 0x10c   : > { %v586_v35 = vpop.f32.mrf.mxu0 }
 0x10d   : > { %v665_v36 = vpack.c.bf16 %v585_v34, %v585_v34  ;;  %v587_v42 = vadd.f32 %v586_v35, %v414_v40  ;;  %v2077_v34 = vld [vmem:[#allocation2 + $0x8] ss:$12 sps:$4 sm:$0xff]  }
 0x10e   : > { %v588_v37 = vpop.f32.mrf.mxu0  ;;  %1771 = vmatpush3.bf16.msra.mxu1 %v2077_v34 }
 0x10f   : > { %671 = vrot.lane.b32.xlu1 %v665_v36, %s2210_s20  ;;  %667 = vrot.lane.b32.xlu0 %v665_v36, %s2211_s21  ;;  %v2424_v46 = vpack.c.bf16 %v587_v42, %v587_v42 }
 0x110   : > { %v589_v38 = vpop.f32.mrf.mxu0  ;;  %1796 = vmatprep.subr.bf16.mxu1 %v2208_v20 }
 0x111   : > { %1773 = vmatmul.mubr.bf16.vlgmr.msra.gmra.mxu1 %v2344_v18 }
 0x112   : > { %1798 = vmatprep.mubr.msk.bf16.mxu1 %vm2209_vm0, %v2208_v20 }
 0x113   : > { %669 = vrot.lane.b32.xlu0 %v665_v36, %s2212_s25 }
 0x181   : > { %v668_v41 = vpop.permute.xlu0 %667  ;;  %v672_v43 = vpop.permute.xlu1 %671 }
 0x182   : > { %v676_v44 = vsel %vm673_vm1, %v665_v36, %v668_v41  ;;  %v923_v58 = vsel %vm673_vm1, %v672_v43, %v665_v36 }
 0x183   : > { %v924_v59 = vsel %vm677_vm3, %v923_v58, %v668_v41  ;;  %v2553_v58 = vld [vmem:[%s2761_s7 + $0x28] sm:$0xff]  }
 0x185   : > { %v670_v45 = vpop.permute.xlu0 %669 }
 0x186   : > { %v679_v47 = vsel %vm677_vm3, %v676_v44, %v670_v45  ;;  %v1065_v48 = vsel %vm673_vm1, %v670_v45, %v672_v43  ;;  %v1207_v49 = vsel %vm673_vm1, %v668_v41, %v670_v45  ;;  %v925_v60 = vsel %vm680_vm2, %v924_v59, %v670_v45  ;;  %v2562_v59 = vld [vmem:[%s2761_s7 + $0x20] sm:$0xff]  }
 0x187   : > { %v682_v50 = vsel %vm680_vm2, %v679_v47, %v672_v43  ;;  %v1066_v51 = vsel %vm677_vm3, %v1065_v48, %v665_v36  ;;  %v1208_v52 = vsel %vm677_vm3, %v1207_v49, %v672_v43  ;;  %v927_v61 = vmul.bf16 %v925_v60, %v2424_v46  ;;  %v2571_v60 = vld [vmem:[%s2761_s7 + $0x18] sm:$0xff]  }
 0x188   : > { %v684_v53 = vmul.bf16 %v682_v50, %v2424_v46  ;;  %v1067_v54 = vsel %vm680_vm2, %v1066_v51, %v668_v41  ;;  %v1209_v55 = vsel %vm680_vm2, %v1208_v52, %v665_v36  ;;  %v648_v36 = vld [vmem:[%s2760_s6] sm:$0x3] }
 0x189   : > { %v1069_v56 = vmul.bf16 %v1067_v54, %v2424_v46  ;;  %v1211_v57 = vmul.bf16 %v1209_v55, %v2424_v46  ;;  %v2516_v37 = vsel %vm789_vm5, %v648_v36, 0 }
 0x18a   : > { %1793 = vmatmul.mubr.bf16.vlgmr.msra.gmra.mxu0 %v684_v53  ;;  %1797 = vmatpush3.bf16.msra.mxu1 %v2516_v37 }
 0x18b   : > { %1823 = vmatpush3.bf16.msra.mxu0 %v2350_v19  ;;  %1838 = vmatprep.mubr.msk.bf16.mxu0 %vm2209_vm0, %v2208_v20 }
 0x18c   : > { %1824 = vmatprep.subr.bf16.mxu0 %v2208_v20  ;;  %1802 = vmatprep.subr.bf16.mxu1 %v2208_v20 }
 0x18f   : > { %1825 = vmatpush3.bf16.msra.mxu0 %v2358_v21 }
 0x190   : > { %1826 = vmatprep.subr.bf16.mxu0 %v2208_v20 }
 0x193   : > { %1827 = vmatpush3.bf16.msra.mxu0 %v2365_v22 }
 0x194   : > { %1828 = vmatprep.subr.bf16.mxu0 %v2208_v20 }
 0x197   : > { %1829 = vmatpush3.bf16.msra.mxu0 %v2372_v23 }
 0x198   : > { %1830 = vmatprep.subr.bf16.mxu0 %v2208_v20 }
 0x19b   : > { %1831 = vmatpush3.bf16.msra.mxu0 %v2379_v24 }
 0x19c   : > { %1832 = vmatprep.subr.bf16.mxu0 %v2208_v20 }
 0x19f   : > { %1833 = vmatpush3.bf16.msra.mxu0 %v2386_v25 }
 0x1a0   : > { %1834 = vmatprep.subr.bf16.mxu0 %v2208_v20 }
 0x1a3   : > { %1835 = vmatpush3.bf16.msra.mxu0 %v2396_v28 }
 0x1a4   : > { %1836 = vmatprep.subr.bf16.mxu0 %v2208_v20 }
 0x1a7   : > { %1837 = vmatpush3.bf16.msra.mxu0 %v2409_v31 }
 0x1a8   : > { %1868 = vmatprep.subr.bf16.mxu0 %v2208_v20 }
 0x1aa   : > { %1839 = vmatmul.mubr.bf16.vlgmr.msra.gmra.mxu0 %v927_v61  ;;  %v2580_v61 = vld [vmem:[%s2761_s7 + $0x10] sm:$0xff]  }
 0x1ab   : > { %1869 = vmatpush3.bf16.msra.mxu0 %v2350_v19  ;;  %1884 = vmatprep.mubr.msk.bf16.mxu0 %vm2209_vm0, %v2208_v20 }
 0x1ac   : > { %1870 = vmatprep.subr.bf16.mxu0 %v2208_v20 }
 0x1af   : > { %1871 = vmatpush3.bf16.msra.mxu0 %v2358_v21 }
 0x1b0   : > { %1872 = vmatprep.subr.bf16.mxu0 %v2208_v20 }
 0x1b3   : > { %1873 = vmatpush3.bf16.msra.mxu0 %v2365_v22 }
 0x1b4   : > { %1874 = vmatprep.subr.bf16.mxu0 %v2208_v20 }
 0x1b7   : > { %1875 = vmatpush3.bf16.msra.mxu0 %v2372_v23 }
 0x1b8   : > { %1876 = vmatprep.subr.bf16.mxu0 %v2208_v20 }
 0x1bb   : > { %1877 = vmatpush3.bf16.msra.mxu0 %v2379_v24 }
 0x1bc   : > { %1878 = vmatprep.subr.bf16.mxu0 %v2208_v20 }
 0x1bf   : > { %1879 = vmatpush3.bf16.msra.mxu0 %v2386_v25 }
 0x1c0   : > { %1880 = vmatprep.subr.bf16.mxu0 %v2208_v20 }
 0x1c3   : > { %1881 = vmatpush3.bf16.msra.mxu0 %v2396_v28 }
 0x1c4   : > { %1882 = vmatprep.subr.bf16.mxu0 %v2208_v20 }
 0x1c7   : > { %1883 = vmatpush3.bf16.msra.mxu0 %v2409_v31 }
 0x1c8   : > { %1914 = vmatprep.subr.bf16.mxu0 %v2208_v20 }
 0x1ca   : > { %1885 = vmatmul.mubr.bf16.vlgmr.msra.gmra.mxu0 %v1069_v56  ;;  %v2538_v56 = vld [vmem:[%s2761_s7 + $0x38] sm:$0xff]  }
 0x1cb   : > { %1915 = vmatpush3.bf16.msra.mxu0 %v2350_v19  ;;  %1930 = vmatprep.mubr.msk.bf16.mxu0 %vm2209_vm0, %v2208_v20 }
 0x1cc   : > { %1916 = vmatprep.subr.bf16.mxu0 %v2208_v20 }
 0x1cf   : > { %1917 = vmatpush3.bf16.msra.mxu0 %v2358_v21 }
 0x1d0   : > { %1918 = vmatprep.subr.bf16.mxu0 %v2208_v20 }
 0x1d3   : > { %1919 = vmatpush3.bf16.msra.mxu0 %v2365_v22 }
 0x1d4   : > { %1920 = vmatprep.subr.bf16.mxu0 %v2208_v20 }
 0x1d7   : > { %1921 = vmatpush3.bf16.msra.mxu0 %v2372_v23 }
 0x1d8   : > { %1922 = vmatprep.subr.bf16.mxu0 %v2208_v20 }
 0x1db   : > { %1923 = vmatpush3.bf16.msra.mxu0 %v2379_v24 }
 0x1dc   : > { %1924 = vmatprep.subr.bf16.mxu0 %v2208_v20 }
 0x1df   : > { %1925 = vmatpush3.bf16.msra.mxu0 %v2386_v25 }
 0x1e0   : > { %1926 = vmatprep.subr.bf16.mxu0 %v2208_v20 }
 0x1e3   : > { %1927 = vmatpush3.bf16.msra.mxu0 %v2396_v28 }
 0x1e4   : > { %1928 = vmatprep.subr.bf16.mxu0 %v2208_v20 }
 0x1e7   : > { %1929 = vmatpush3.bf16.msra.mxu0 %v2409_v31 }
 0x1e8   : > { %1940 = vmatprep.subr.bf16.mxu0 %v2208_v20 }
 0x1ea   : > { %1931 = vmatmul.mubr.bf16.vlgmr.msra.gmra.mxu0 %v1211_v57  ;;  %v2544_v57 = vld [vmem:[%s2761_s7 + $0x30] sm:$0xff]  }
 0x1eb   : > { %1956 = vmatprep.mubr.msk.bf16.mxu0 %vm2209_vm0, %v2208_v20  ;;  %1941 = vmatpush3.bf16.msra.mxu0 %v2538_v56 }
 0x1ec   : > { %1942 = vmatprep.subr.bf16.mxu0 %v2208_v20 }
 0x1ef   : > { %1943 = vmatpush3.bf16.msra.mxu0 %v2544_v57 }
 0x1f0   : > { %1944 = vmatprep.subr.bf16.mxu0 %v2208_v20 }
 0x1f3   : > { %1945 = vmatpush3.bf16.msra.mxu0 %v2553_v58 }
 0x1f4   : > { %1946 = vmatprep.subr.bf16.mxu0 %v2208_v20 }
 0x1f7   : > { %1947 = vmatpush3.bf16.msra.mxu0 %v2562_v59 }
 0x1f8   : > { %1948 = vmatprep.subr.bf16.mxu0 %v2208_v20 }
 0x1fb   : > { %1949 = vmatpush3.bf16.msra.mxu0 %v2571_v60 }
 0x1fc   : > { %1950 = vmatprep.subr.bf16.mxu0 %v2208_v20 }
 0x1ff   : > { %1951 = vmatpush3.bf16.msra.mxu0 %v2580_v61 }
 0x200   : > { %1952 = vmatprep.subr.bf16.mxu0 %v2208_v20 }
 0x24a   : > { %v767_v62 = vpop.f32.mrf.mxu0 }
 0x24b   : > { %v774_v63 = vsel %vm773_vm4, %v767_v62, -inf }
 0x24c   : > { %775 = vmax.xlane.f32.xlu1 %v774_v63  ;;  %v1794_v0 = vpop.f32.mrf.mxu0  ;;  %v625_v63 = vpop.f32.mrf.mxu1 }
 0x24e   : > { %v770_v1 = vpop.f32.mrf.mxu0  ;;  %v1774_v0 = vpop.f32.mrf.mxu1 }
 0x24f   : > { %v2093_v0 = vld [vmem:[%s2757_s3] sm:$0xff]  }
 0x250   : > { %v1795_v2 = vpop.f32.mrf.mxu0  ;;  %v628_v1 = vpop.f32.mrf.mxu1 }
 0x252   : > { %v1775_v2 = vpop.f32.mrf.mxu1 }
 0x26a   : > { %v962_v3 = vpop.f32.mrf.mxu0 }
 0x26b   : > { %v968_v32 = vsel %vm773_vm4, %v962_v3, -inf }
 0x26c   : > { %v1840_v4 = vpop.f32.mrf.mxu0 }
 0x26e   : > { %v965_v5 = vpop.f32.mrf.mxu0 }
 0x26f   : > { %v417_v5 = vsub.s32 2, %v2391_v27 }
 0x270   : > { %v1841_v6 = vpop.f32.mrf.mxu0 }
 0x271   : > { %v418_v6 = vrot.slane %v2404_v30, %v417_v5 }
 0x273   : > { %v2608_v7 = vadd.f32 %v625_v63, %v418_v6  ;;  %v2092_v63 = vld [vmem:[%s2757_s3 + $0x8] sm:$0xff]  }
 0x28a   : > { %v1104_v13 = vpop.f32.mrf.mxu0 }
 0x28b   : > { %v1110_v33 = vsel %vm773_vm4, %v1104_v13, -inf }
 0x28c   : > { %v1886_v15 = vpop.f32.mrf.mxu0 }
 0x28e   : > { %v1107_v16 = vpop.f32.mrf.mxu0 }
 0x290   : > { %v1887_v19 = vpop.f32.mrf.mxu0 }
 0x2aa   : > { %v1246_v21 = vpop.f32.mrf.mxu0 }
 0x2ab   : > { %v1252_v35 = vsel %vm773_vm4, %v1246_v21, -inf }
 0x2ac   : > { %v1932_v22 = vpop.f32.mrf.mxu0 }
 0x2ae   : > { %v1249_v23 = vpop.f32.mrf.mxu0 }
 0x2b0   : > { %v1933_v24 = vpop.f32.mrf.mxu0 }
 0x2d5   : > { %v776_v25 = vpop.xlane.xlu1 %775 }
 0x2d6   : > { %v777_v26 = vsub.f32 %v767_v62, %v776_v25  ;;  %v2589_v62 = vld [vmem:[%s2761_s7 + $0x8] sm:$0xff]  }
 0x2d7   : > { %1953 = vmatpush3.bf16.msra.mxu0 %v2589_v62 }
 0x2d8   : > { %v778_v28 = vmul.f32 1.442695, %v777_v26  ;;  %1954 = vmatprep.subr.bf16.mxu0 %v2208_v20 }
 0x2da   : > { %2094 = vpow2.f32 %v778_v28 }
 0x2e7   : > { %v2095_v29 = vpop.eup %2094 }
 0x2e8   : > { %v780_v31 = vsel %vm773_vm4, %v2095_v29, 0.0 }
 0x2e9   : > { %781 = vadd.xlane.f32.xlu0 %v780_v31 }
 0x2ed   : > { %969 = vmax.xlane.f32.xlu0 %v968_v32 }
 0x2f1   : > { %1111 = vmax.xlane.f32.xlu0 %v1110_v33 }
 0x2f5   : > { %1253 = vmax.xlane.f32.xlu0 %v1252_v35 }
 0x372   : > { %v782_v38 = vpop.xlane.xlu0 %781 }
 0x373   : > { %2096 = vrcp.f32 %v782_v38 }
 0x376   : > { %v970_v39 = vpop.xlane.xlu0 %969 }
 0x377   : > { %v971_v40 = vsub.f32 %v962_v3, %v970_v39  ;;  %v2601_v3 = vld [vmem:[%s2761_s7] sm:$0xff]  }
 0x378   : > { %1955 = vmatpush3.bf16.msra.mxu0 %v2601_v3 }
 0x379   : > { %v972_v41 = vmul.f32 1.442695, %v971_v40 }
 0x37a   : > { %v1112_v18 = vpop.xlane.xlu0 %1111 }
 0x37b   : > { %2098 = vpow2.f32 %v972_v41  ;;  %v1113_v42 = vsub.f32 %v1104_v13, %v1112_v18 }
 0x37d   : > { %v1114_v43 = vmul.f32 1.442695, %v1113_v42 }
 0x37e   : > { %v1254_v44 = vpop.xlane.xlu0 %1253 }
 0x37f   : > { %2100 = vpow2.f32 %v1114_v43  ;;  %v1255_v45 = vsub.f32 %v1246_v21, %v1254_v44 }
 0x380   : > { %v2097_v46 = vpop.eup %2096 }
 0x381   : > { %v1256_v47 = vmul.f32 1.442695, %v1255_v45  ;;  %v784_v48 = vmul.f32 %v2097_v46, %v2095_v29 }
 0x383   : > { %2102 = vpow2.f32 %v1256_v47  ;;  %v785_v49 = vpack.c.bf16 %v784_v48, %v784_v48 }
 0x385   : > { %1799 = vmatmul.mubr.msk.bf16.vlgmr.msra.gmra.mxu1 %vm773_vm4, %v785_v49 }
 0x386   : > { %1818 = vmatprep.mubr.msk.bf16.mxu1 %vm2209_vm0, %v2208_v20  ;;  %1803 = vmatpush3.bf16.msra.mxu1 %v2538_v56 }
 0x387   : > { %1804 = vmatprep.subr.bf16.mxu1 %v2208_v20 }
 0x388   : > { %v2523_v50 = vpop.eup %2098 }
 0x389   : > { %v974_v51 = vsel %vm773_vm4, %v2523_v50, 0.0 }
 0x38a   : > { %975 = vadd.xlane.f32.xlu1 %v974_v51  ;;  %1805 = vmatpush3.bf16.msra.mxu1 %v2544_v57 }
 0x38b   : > { %1806 = vmatprep.subr.bf16.mxu1 %v2208_v20 }
 0x38c   : > { %v2527_v52 = vpop.eup %2100 }
 0x38d   : > { %v1116_v53 = vsel %vm773_vm4, %v2527_v52, 0.0 }
 0x38e   : > { %1117 = vadd.xlane.f32.xlu1 %v1116_v53  ;;  %1807 = vmatpush3.bf16.msra.mxu1 %v2553_v58 }
 0x38f   : > { %1808 = vmatprep.subr.bf16.mxu1 %v2208_v20 }
 0x390   : > { %v2531_v54 = vpop.eup %2102 }
 0x391   : > { %v1258_v55 = vsel %vm773_vm4, %v2531_v54, 0.0 }
 0x392   : > { %1259 = vadd.xlane.f32.xlu1 %v1258_v55  ;;  %1809 = vmatpush3.bf16.msra.mxu1 %v2562_v59 }
 0x393   : > { %1810 = vmatprep.subr.bf16.mxu1 %v2208_v20 }
 0x396   : > { %1811 = vmatpush3.bf16.msra.mxu1 %v2571_v60 }
 0x397   : > { %1812 = vmatprep.subr.bf16.mxu1 %v2208_v20 }
 0x39a   : > { %1813 = vmatpush3.bf16.msra.mxu1 %v2580_v61 }
 0x39b   : > { %1814 = vmatprep.subr.bf16.mxu1 %v2208_v20 }
 0x39e   : > { %1815 = vmatpush3.bf16.msra.mxu1 %v2589_v62 }
 0x39f   : > { %1816 = vmatprep.subr.bf16.mxu1 %v2208_v20 }
 0x3a2   : > { %1817 = vmatpush3.bf16.msra.mxu1 %v2601_v3 }
 0x3a3   : > { %1842 = vmatprep.subr.bf16.mxu1 %v2208_v20 }
 0x413   : > { %v976_v4 = vpop.xlane.xlu1 %975 }
 0x414   : > { %2104 = vrcp.f32 %v976_v4 }
 0x417   : > { %v1118_v15 = vpop.xlane.xlu1 %1117 }
 0x418   : > { %2106 = vrcp.f32 %v1118_v15 }
 0x41b   : > { %v1260_v34 = vpop.xlane.xlu1 %1259 }
 0x41c   : > { %2108 = vrcp.f32 %v1260_v34 }
 0x421   : > { %v2105_v12 = vpop.eup %2104 }
 0x422   : > { %v978_v27 = vmul.f32 %v2105_v12, %v2523_v50 }
 0x424   : > { %v979_v30 = vpack.c.bf16 %v978_v27, %v978_v27 }
 0x425   : > { %v2107_v28 = vpop.eup %2106 }
 0x426   : > { %v1120_v32 = vmul.f32 %v2107_v28, %v2527_v52 }
 0x428   : > { %v1121_v33 = vpack.c.bf16 %v1120_v32, %v1120_v32 }
 0x429   : > { %v2109_v43 = vpop.eup %2108 }
 0x42a   : > { %v1262_v46 = vmul.f32 %v2109_v43, %v2531_v54 }
 0x42c   : > { %v1263_v47 = vpack.c.bf16 %v1262_v46, %v1262_v46 }
 0x445   : > { %v827_v8 = vpop.f32.mrf.mxu1 }
 0x446   : > { %v833_v9 = vmul.f32 %v827_v8, %v2608_v7 }
 0x447   : > { %v1800_v10 = vpop.f32.mrf.mxu1 }
 0x448   : > { %v834_v11 = vpack.c.bf16 %v833_v9, %v833_v9 }
 0x449   : > { %v830_v13 = vpop.f32.mrf.mxu1 }
 0x44a   : > { %1819 = vmatmul.mubr.bf16.vlgmr.msra.gmra.mxu1 %v834_v11  ;;  %v1643_v11 = vld [vmem:[%s2758_s4] ss:$0 sm:$0xff] }
 0x44b   : > { %1843 = vmatpush3.bf16.msra.mxu1 %v2516_v37  ;;  %v1801_v14 = vpop.f32.mrf.mxu1  ;;  %1844 = vmatprep.mubr.msk.bf16.mxu1 %vm2209_vm0, %v2208_v20 }
 0x44c   : > { %1848 = vmatprep.subr.bf16.mxu1 %v2208_v20 }
 0x452   : > { %1845 = vmatmul.mubr.msk.bf16.vlgmr.msra.gmra.mxu1 %vm773_vm4, %v979_v30 }
 0x453   : > { %1849 = vmatpush3.bf16.msra.mxu1 %v2538_v56  ;;  %1864 = vmatprep.mubr.msk.bf16.mxu1 %vm2209_vm0, %v2208_v20 }
 0x454   : > { %1850 = vmatprep.subr.bf16.mxu1 %v2208_v20 }
 0x457   : > { %1851 = vmatpush3.bf16.msra.mxu1 %v2544_v57 }
 0x458   : > { %1852 = vmatprep.subr.bf16.mxu1 %v2208_v20 }
 0x45b   : > { %1853 = vmatpush3.bf16.msra.mxu1 %v2553_v58 }
 0x45c   : > { %1854 = vmatprep.subr.bf16.mxu1 %v2208_v20 }
 0x45f   : > { %1855 = vmatpush3.bf16.msra.mxu1 %v2562_v59 }
 0x460   : > { %1856 = vmatprep.subr.bf16.mxu1 %v2208_v20 }
 0x463   : > { %1857 = vmatpush3.bf16.msra.mxu1 %v2571_v60 }
 0x464   : > { %1858 = vmatprep.subr.bf16.mxu1 %v2208_v20 }
 0x467   : > { %1859 = vmatpush3.bf16.msra.mxu1 %v2580_v61 }
 0x468   : > { %1860 = vmatprep.subr.bf16.mxu1 %v2208_v20 }
 0x46b   : > { %1861 = vmatpush3.bf16.msra.mxu1 %v2589_v62 }
 0x46c   : > { %1862 = vmatprep.subr.bf16.mxu1 %v2208_v20 }
 0x46f   : > { %1863 = vmatpush3.bf16.msra.mxu1 %v2601_v3 }
 0x470   : > { %1888 = vmatprep.subr.bf16.mxu1 %v2208_v20 }
 0x50a   : > { %v2635_v16 = vpop.f32.mrf.mxu1 }
 0x50c   : > { %v1820_v19 = vpop.f32.mrf.mxu1 }
 0x50e   : > { %v920_v21 = vpop.f32.mrf.mxu1 }
 0x510   : > { %v1821_v22 = vpop.f32.mrf.mxu1 }
 0x512   : > { %v1017_v23 = vpop.f32.mrf.mxu1 }
 0x513   : > { %v1023_v24 = vmul.f32 %v1017_v23, %v2608_v7 }
 0x514   : > { %v1846_v25 = vpop.f32.mrf.mxu1 }
 0x515   : > { %v1024_v26 = vpack.c.bf16 %v1023_v24, %v1023_v24 }
 0x516   : > { %v1020_v29 = vpop.f32.mrf.mxu1 }
 0x517   : > { %1865 = vmatmul.mubr.bf16.vlgmr.msra.gmra.mxu1 %v1024_v26  ;;  %v1653_v29 = vld [vmem:[%s2763_s9] ss:$0 sm:$0xff] }
 0x518   : > { %1889 = vmatpush3.bf16.msra.mxu1 %v2516_v37  ;;  %v1847_v31 = vpop.f32.mrf.mxu1  ;;  %1890 = vmatprep.mubr.msk.bf16.mxu1 %vm2209_vm0, %v2208_v20 }
 0x519   : > { %1894 = vmatprep.subr.bf16.mxu1 %v2208_v20 }
 0x51f   : > { %1891 = vmatmul.mubr.msk.bf16.vlgmr.msra.gmra.mxu1 %vm773_vm4, %v1121_v33 }
 0x520   : > { %1895 = vmatpush3.bf16.msra.mxu1 %v2538_v56  ;;  %1910 = vmatprep.mubr.msk.bf16.mxu1 %vm2209_vm0, %v2208_v20 }
 0x521   : > { %1896 = vmatprep.subr.bf16.mxu1 %v2208_v20 }
 0x524   : > { %1897 = vmatpush3.bf16.msra.mxu1 %v2544_v57  ;;  %v2086_v57 = vld [vmem:[%s2757_s3 + $0x38] sm:$0xff]  }
 0x525   : > { %1898 = vmatprep.subr.bf16.mxu1 %v2208_v20 }
 0x528   : > { %1899 = vmatpush3.bf16.msra.mxu1 %v2553_v58  ;;  %v2087_v58 = vld [vmem:[%s2757_s3 + $0x30] sm:$0xff]  }
 0x529   : > { %1900 = vmatprep.subr.bf16.mxu1 %v2208_v20 }
 0x52c   : > { %1901 = vmatpush3.bf16.msra.mxu1 %v2562_v59  ;;  %v2088_v59 = vld [vmem:[%s2757_s3 + $0x28] sm:$0xff]  }
 0x52d   : > { %1902 = vmatprep.subr.bf16.mxu1 %v2208_v20 }
 0x530   : > { %1903 = vmatpush3.bf16.msra.mxu1 %v2571_v60  ;;  %v2089_v60 = vld [vmem:[%s2757_s3 + $0x20] sm:$0xff]  }
 0x531   : > { %1904 = vmatprep.subr.bf16.mxu1 %v2208_v20 }
 0x534   : > { %1905 = vmatpush3.bf16.msra.mxu1 %v2580_v61  ;;  %v2090_v61 = vld [vmem:[%s2757_s3 + $0x18] sm:$0xff]  }
 0x535   : > { %1906 = vmatprep.subr.bf16.mxu1 %v2208_v20 }
 0x538   : > { %1907 = vmatpush3.bf16.msra.mxu1 %v2589_v62  ;;  %v2091_v62 = vld [vmem:[%s2757_s3 + $0x10] sm:$0xff]  }
 0x539   : > { %1908 = vmatprep.subr.bf16.mxu1 %v2208_v20 }
 0x53c   : > { %1909 = vmatpush3.bf16.msra.mxu1 %v2601_v3 }
 0x53d   : > { %1934 = vmatprep.subr.bf16.mxu1 %v2208_v20 }
 0x5d7   : > { %v1059_v35 = vpop.f32.mrf.mxu1 }
 0x5d8   : > { %1350 = vrot.lane.b32.xlu0 %v1059_v35, %s2211_s21  ;;  %s2142_s21 = sshll.u32 %s2213_s27, 4  ;;  %s2143_s21 = int_to_ptr.vmem [resolvable:$false] %s2142_s21 }
 0x5d9   : > { %v1866_v36 = vpop.f32.mrf.mxu1  ;;  %s2144_s17 = scalar_lea.vmem %s2143_s21, 256 }
 0x5db   : > { %v1062_v38 = vpop.f32.mrf.mxu1 }
 0x5dd   : > { %v1867_v39 = vpop.f32.mrf.mxu1 }
 0x5df   : > { %v1159_v40 = vpop.f32.mrf.mxu1 }
 0x5e0   : > { %v1165_v41 = vmul.f32 %v1159_v40, %v2608_v7 }
 0x5e1   : > { %v1892_v18 = vpop.f32.mrf.mxu1 }
 0x5e2   : > { %v1166_v42 = vpack.c.bf16 %v1165_v41, %v1165_v41 }
 0x5e3   : > { %v1162_v44 = vpop.f32.mrf.mxu1 }
 0x5e4   : > { %1911 = vmatmul.mubr.bf16.vlgmr.msra.gmra.mxu1 %v1166_v42 }
 0x5e5   : > { %1935 = vmatpush3.bf16.msra.mxu1 %v2516_v37  ;;  %v1893_v45 = vpop.f32.mrf.mxu1  ;;  %1936 = vmatprep.mubr.msk.bf16.mxu1 %vm2209_vm0, %v2208_v20 }
 0x5e6   : > { %1960 = vmatprep.subr.bf16.mxu1 %v2208_v20 }
 0x5ec   : > { %1937 = vmatmul.mubr.msk.bf16.vlgmr.msra.gmra.mxu1 %vm773_vm4, %v1263_v47 }
 0x5ed   : > { %1976 = vmatprep.mubr.msk.bf16.mxu1 %vm2209_vm0, %v2208_v20  ;;  %1961 = vmatpush3.bf16.msra.mxu1 %v2086_v57 }
 0x5ee   : > { %1962 = vmatprep.subr.bf16.mxu1 %v2208_v20 }
 0x5f1   : > { %1963 = vmatpush3.bf16.msra.mxu1 %v2087_v58 }
 0x5f2   : > { %1964 = vmatprep.subr.bf16.mxu1 %v2208_v20 }
 0x5f5   : > { %1965 = vmatpush3.bf16.msra.mxu1 %v2088_v59 }
 0x5f6   : > { %1966 = vmatprep.subr.bf16.mxu1 %v2208_v20 }
 0x5f9   : > { %1967 = vmatpush3.bf16.msra.mxu1 %v2089_v60 }
 0x5fa   : > { %1968 = vmatprep.subr.bf16.mxu1 %v2208_v20 }
 0x5fd   : > { %1969 = vmatpush3.bf16.msra.mxu1 %v2090_v61 }
 0x5fe   : > { %1970 = vmatprep.subr.bf16.mxu1 %v2208_v20 }
 0x601   : > { %1971 = vmatpush3.bf16.msra.mxu1 %v2091_v62 }
 0x602   : > { %1972 = vmatprep.subr.bf16.mxu1 %v2208_v20 }
 0x605   : > { %1973 = vmatpush3.bf16.msra.mxu1 %v2092_v63 }
 0x606   : > { %1974 = vmatprep.subr.bf16.mxu1 %v2208_v20 }
 0x609   : > { %1975 = vmatpush3.bf16.msra.mxu1 %v2093_v0 }
 0x64a   : > { %v1351_v5 = vpop.permute.xlu0 %1350 }
 0x6a4   : > { %v1201_v48 = vpop.f32.mrf.mxu1 }
 0x6a5   : > { %1354 = vrot.lane.b32.xlu1 %v1201_v48, %s2212_s25 }
 0x6a6   : > { %v1912_v49 = vpop.f32.mrf.mxu1 }
 0x6a8   : > { %v1204_v50 = vpop.f32.mrf.mxu1 }
 0x6aa   : > { %v1913_v37 = vpop.f32.mrf.mxu1 }
 0x6ac   : > { %v1301_v51 = vpop.f32.mrf.mxu1 }
 0x6ad   : > { %v1307_v52 = vmul.f32 %v1301_v51, %v2608_v7  ;;  %v1361_v7 = vsel %vm673_vm1, %v2635_v16, %v1351_v5 }
 0x6ae   : > { %v1938_v53 = vpop.f32.mrf.mxu1 }
 0x6af   : > { %v1308_v55 = vpack.c.bf16 %v1307_v52, %v1307_v52 }
 0x6b0   : > { %v1304_v54 = vpop.f32.mrf.mxu1 }
 0x6b1   : > { %1957 = vmatmul.mubr.bf16.vlgmr.msra.gmra.mxu0 %v1308_v55 }
 0x6b2   : > { %v1939_v56 = vpop.f32.mrf.mxu1 }
 0x717   : > { %v1355_v6 = vpop.permute.xlu1 %1354 }
 0x718   : > { %v1362_v8 = vsel %vm677_vm3, %v1361_v7, %v1355_v6 }
 0x771   : > { %v1343_v1 = vpop.f32.mrf.mxu0 }
 0x772   : > { %1358 = vrot.lane.b32.xlu1 %v1343_v1, %s2210_s20  ;;  %s363_s20 = sand.u32 1, %s2194_s14  }
 0x773   : > { %v1958_v2 = vpop.f32.mrf.mxu0  ;;  %s1597_s26 = sshll.u32 %s363_s20, 3  ;;  %s1507_s1 = scalar_lea.sflag [#allocation4], %s363_s20 }
 0x774   : > { %s365_s25 = scalar_lea.vmem [#allocation5], %s1597_s26 }
 0x775   : > { %v1346_v3 = vpop.f32.mrf.mxu0  ;;  %s1520_s11 = sshll.u32 %s365_s25, 4  ;;  %s1521_s11 = int_to_ptr.vmem [resolvable:$true] %s1520_s11 }
 0x776   : > { %s2138_s2 = scalar_lea.vmem %s1521_s11, 128  ;;  %p2145_p11 = scmp.lt.s32.totalorder %s1521_s11, %s2143_s21 }
 0x777   : > { %v1959_v4 = vpop.f32.mrf.mxu0  ;;  %p2139_p8 = scmp.ne.s32.totalorder %s1521_s11, %s2138_s2  ;;  %p2146_p12 = scmp.lt.s32.totalorder %s2144_s17, %s2138_s2 }
 0x779   : > { %p2140_p9 = pnand %p2139_p8, %p2307_p5  ;;  %p2147_p13 = por %p2146_p12, %p2145_p11 }
 0x77b   : > { %p2141_p10 = pneg %p2140_p9 }
 0x77d   : > { %p2148_p0 = pnand %p2147_p13, %p2141_p10 }
 0x7e4   : > { %v1359_v9 = vpop.permute.xlu1 %1358 }
 0x7e5   : > { %v1363_v20 = vsel %vm680_vm2, %v1362_v8, %v1359_v9 }
 0x7e6   : > { %v1364_v10 = vpack.c.bf16 %v1363_v20, %v1363_v20 }
 0x7e8   : > { %1977 = vmatmul.mubr.bf16.vlgmr.msra.gmra.mxu1 %v1364_v10 }
 0x8a8   : > { %v1470_v12 = vpop.f32.mrf.mxu1 }
 0x8a9   : > { %v1471_v13 = vadd.f32 %v1643_v11, %v1470_v12 }
 0x8aa   : > { %v1978_v14 = vpop.f32.mrf.mxu1 }
 0x8ab   : > { %v1476_v27 = vadd.f32 %v1471_v13, %v2340_v17  ;;  %v1652_v17 = vld [vmem:[%s2762_s8] ss:$0 sm:$0xff] }
 0x8ac   : > { %v1473_v30 = vpop.f32.mrf.mxu1 }
 0x8ad   : > { %1477 = vadd.xlane.f32.xlu0 %v1476_v27 }
 0x8ae   : > { %v1979_v15 = vpop.f32.mrf.mxu1 }
 0x936   : > { %v1478_v16 = vpop.xlane.xlu0 %1477 }
 0x937   : > { %v1480_v19 = vmul.f32 0.0078125, %v1478_v16 }
 0x939   : > { %v1481_v21 = vsub.f32 %v1476_v27, %v1480_v19 }
 0x93b   : > { %v1482_v22 = vmul.f32 %v1481_v21, %v1481_v21 }
 0x93d   : > { %1483 = vadd.xlane.f32.xlu1 %v1482_v22 }
 0x9c6   : > { %v1484_v23 = vpop.xlane.xlu1 %1483 }
 0x9c7   : > { %v1485_v24 = vmul.f32 0.0078125, %v1484_v23 }
 0x9c9   : > { %v1486_v25 = vadd.f32 1e-12, %v1485_v24 }
 0x9cb   : > { %2110 = vrsqrt.f32 %v1486_v25 }
 0x9d8   : > { %v2111_v26 = vpop.eup %2110 }
 0x9d9   : > { %v1488_v28 = vmul.f32 %v2111_v26, %v1481_v21 }
 0x9db   : > { %v1496_v31 = vmul.f32 %v1652_v17, %v1488_v28 }
 0x9dd   : > { %v1504_v32 = vadd.f32 %v1653_v29, %v1496_v31 }
 0x9df   : > { %1505 = vst [vmem:[%s365_s25] sm:$0xff] %v1504_v32 }
 0x9e0   : > { %2151 = shalt.err (!%p2148_p0)
}
 0x9e1   : > { %s2152_s26 = scalar_lea.hbm %s1518_s0, 128  ;;  %s2156_s29 = scalar_lea.hbm %s2764_s10, 256 }
 0x9e2   : > { %p2153_p1 = scmp.ne.s32.totalorder %s1518_s0, %s2152_s26  ;;  %p2157_p4 = scmp.lt.s32.totalorder %s1518_s0, %s2764_s10 }
 0x9e3   : > { %p2158_p7 = scmp.lt.s32.totalorder %s2156_s29, %s2152_s26 }
 0x9e4   : > { %p2154_p2 = pnand %p2153_p1, %p2307_p5 }
 0x9e5   : > { %p2159_p6 = por %p2158_p7, %p2157_p4 }
 0x9e6   : > { %p2155_p3 = pneg %p2154_p2 }
 0x9e8   : > { %p2160_p8 = pnand %p2159_p6, %p2155_p3 }
 0x9ea   : > { %2163 = shalt.err (!%p2160_p8)
}
 0x9eb   : > { %1984 = dma.vmem_to_hbm [thread:$0]  (%p2307_p5), %s1521_s11, 128, %s1518_s0, %s1507_s1  }
 0x9ec PF: > { %p1996_p9 = scmp.ge.s32.totalorder %s2202_s16, 2  ;;  %s1532_s2 = sand.u32 1, %s2190_s13  }
 0x9ed   : > { %p2774_p10 = scmp.ne.s32.totalorder %s2769_s24, 0  ;;  %s1533_s12 = scalar_lea.sflag [#allocation4], %s1532_s2 }
 0x9ef   : > { %p1991_p11 = pnand %p1996_p9, %p2774_p10 }
 0x9f1   : > { %p1992_p12 = pneg %p1991_p11 }
 0x9f3   : > { %2185 = dma.done.wait (%p1992_p12), %s1533_s12, 128  }
 0x9f4   : > { %2187 = vsyncadd (%p1992_p12), %s1533_s12, 4294967168  ;;  %p21_p13 = scmp.ge.s32.totalorder %s2294_s19, 4   ;;  %s2775_s13 = smov %s2194_s14 }
 0x9f5   : > { %s2776_s14 = smov %s2198_s15  ;;  %s2777_s15 = smov %s2305_s22 }
 0x9f6   : > { %s2778_s16 = smov %s2294_s19  ;;  %23 = sbr.rel (!%p21_p13) target bundleno = 8 (0x8), region = 100 }
 0x9fb   :  { %1538 = vsyncpa [#allocation3], 1 }
 0x9fc   :  { %1540 = vsyncpa [#allocation3 + $0x1], 1 }
 0x9fd   :  { %1541 = vsyncpa [#allocation4], 1 }
 0x9fe   :  { %1543 = vsyncpa [#allocation4 + $0x1], 1 }

// kernel: tpu_custom_call.1
= control target key start
LH: loop header
LB: loop body
LE: loop exit
PB: predicated region body
PF: predicated region fallthrough
CT: control target
= control target key end

     0   :  { %s2754_s0 = inlined_call_operand.vmem [shape: f32[16,128], index: 0, kind: input, shape index: {}]   ;;  %s2755_s1 = inlined_call_operand.hbm [shape: bf16[128,384], index: 1, kind: input, shape index: {}]   ;;  %s2756_s2 = inlined_call_operand.vmem [shape: f32[1,384], index: 2, kind: input, shape index: {}]   ;;  %s2757_s3 = inlined_call_operand.vmem [shape: bf16[128,128], index: 3, kind: input, shape index: {}]   ;;  %s2758_s4 = inlined_call_operand.vmem [shape: f32[1,128], index: 4, kind: input, shape index: {}]   ;;  %s2759_s5 = inlined_call_operand.vmem [shape: bf16[128,4], index: 5, kind: input, shape index: {}]   ;;  %s2760_s6 = inlined_call_operand.vmem [shape: bf16[4,128], index: 6, kind: input, shape index: {}]   ;;  %s2761_s7 = inlined_call_operand.vmem [shape: bf16[128,32], index: 7, kind: input, shape index: {}]   ;;  %s2762_s8 = inlined_call_operand.vmem [shape: f32[1,128], index: 8, kind: input, shape index: {}]   ;;  %s2763_s9 = inlined_call_operand.vmem [shape: f32[1,128], index: 9, kind: input, shape index: {}]   ;;  %s2764_s10 = inlined_call_operand.hbm [shape: f32[16,128], index: 10, kind: output, shape index: {}]  }
   0x1   :  { %2765 = sst [smem:[#allocation8_spill]] %s2754_s0 }
   0x2   :  { %2766 = sst [smem:[#allocation9_spill]] %s2755_s1 }
   0x3   :  { %2767 = sst [smem:[#allocation10_spill]] %s2756_s2 }
   0x4   :  { %15 = vsyncpa [#allocation3], 0 }
   0x5   :  { %16 = vsyncpa [#allocation4], 0 }
   0x6   :  { %18 = vsyncpa [#allocation4 + $0x1], 0  ;;  %s2269_s13 = smov 0   ;;  %s2271_s14 = smov 0  }
   0x7   :  { %s2273_s15 = smov 0   ;;  %s2275_s16 = smov 0  }
   0x8 LB: > { %s2290_s17 = sadd.s32 4294967295, %s2202_s16   ;;  %s1591_s18 = sadd.s32 4294967294, %s2202_s16   ;;  %s2202_s16 = sphi %s2275_s16, %s2778_s16   ;;  %s2198_s15 = sphi %s2273_s15, %s2777_s15   ;;  %s2194_s14 = sphi %s2271_s14, %s2776_s14   ;;  %s2190_s13 = sphi %s2269_s13, %s2775_s13  }
   0x9   : > { %s2294_s19 = sadd.s32 1, %s2202_s16   ;;  %s246_s20 = sadd.s32 1, %s2198_s15 }
   0xa   : > { %s243_s21 = ssub.s32 %s2202_s16, %s2294_s19  ;;  %p256_p0 = scmp.ne.s32.totalorder %s2198_s15, %s2194_s14 }
   0xb   : > { %p244_p1 = scmp.eq.s32.totalorder %s243_s21, 0  ;;  %p257_p2 = scmp.eq.s32.totalorder %s2290_s17, 1 }
   0xc   : > { %p262_p3 = scmp.ne.s32.totalorder %s2194_s14, %s2190_s13  ;;  %p263_p4 = scmp.eq.s32.totalorder %s1591_s18, 1 }
   0xd   : > { %s2305_s22 = scalar_select %p244_p1, %s2198_s15, %s246_s20  }
   0xe   : > { %p2307_p5 = por %p257_p2, %p256_p0  ;;  %p2311_p6 = por %p263_p4, %p262_p3 }
   0xf   : > { %p1592_p7 = scmp.ge.s32.totalorder %s2202_s16, 1  ;;  %p270_p8 = scmp.lt.s32.totalorder %s2202_s16, 3 }
  0x10   : > { %s2769_s24 = scalar_select %p2311_p6, 1, 0 }
  0x11   : > { %p1994_p9 = scmp.eq.s32.totalorder %s2290_s17, 0  ;;  %p2318_p10 = pnand %p1592_p7, %p270_p8 }
  0x12   : > { %s2204_s26 = smov [#allocation2]  }
  0x13   : > { %s282_s27 = sshll.u32 %s2204_s26, 4  ;;  %p1986_p11 = pneg %p2318_p10  ;;  %s283_s27 = int_to_ptr.vmem [resolvable:$true] %s282_s27 }
  0x14   : > { %s2123_s28 = scalar_lea.vmem %s283_s27, 3072  ;;  %p2131_p3 = scmp.lt.s32.totalorder %s283_s27, %s283_s27 }
  0x15   : > { %p1987_p12 = pnand %p1994_p9, %p1986_p11  ;;  %p2124_p0 = scmp.ne.s32.totalorder %s283_s27, %s2123_s28 }
  0x16   : > { %p2132_p4 = scmp.lt.s32.totalorder %s2123_s28, %s2123_s28 }
  0x17   : > { %p2114_p13 = pneg %p1987_p12 }
  0x18   : > { %p2133_p6 = por %p2132_p4, %p2131_p3 }
  0x19   : > { %p2126_p1 = pnand %p2124_p0, %p2114_p13 }
  0x1b   : > { %p2127_p2 = pneg %p2126_p1 }
  0x1d   : > { %p2134_p7 = pnand %p2133_p6, %p2127_p2 }
  0x1f   : > { %2137 = shalt.err (!%p2134_p7)
}
  0x20   : > { %s2205_s29 = smov 192   ;;  %s2206_s30 = smov 12  }
  0x21   : > { %s2771_s1 = sld [smem:[#allocation9_spill]] }
  0x23   : > { %329 = sbr.rel (%p2318_p10) target bundleno = 2540 (0x9ec), region = 60 }
  0x27   : > { %1989 = dma.hbm_to_vmem [thread:$0]  (!%p1987_p12), %s2771_s1, 3072, %s283_s27, [#allocation3], %s2205_s29, %s2205_s29, %s2206_s30  }
  0x28   : > { %2181 = dma.done.wait (%p1994_p9), [#allocation3], 3072  }
  0x29   : > { %2183 = vsyncadd (%p1994_p9), [#allocation3], 4294964224  ;;  %v2207_v0 = vmov 0   ;;  %v2038_v1 = vld [vmem:[#allocation2 + $0xac] ss:$12 sps:$4 sm:$0xff]   ;;  %p366_p6 = scmp.lt.s32.totalorder %s2290_s17, 1  ;;  %v407_v26 = vlaneseq }
  0x2a   : > { %582 = vmatprep.mubr.bf16.mxu0 %v2207_v0  ;;  %v2040_v2 = vld [vmem:[#allocation2 + $0xa8] ss:$12 sps:$4 sm:$0xff]   ;;  %550 = vmatprep.subr.bf16.mxu0 %v2038_v1  ;;  %v2043_v4 = vld [vmem:[#allocation2 + $0x90] ss:$12 sps:$4 sm:$0xff]   ;;  %v2046_v6 = vld [vmem:[#allocation2 + $0x78] ss:$12 sps:$4 sm:$0xff]  }
  0x2b   : > { %v2041_v3 = vld [vmem:[#allocation2 + $0x94] ss:$12 sps:$4 sm:$0xff]   ;;  %551 = vmatpush1.bf16.msra.mxu0 %v2040_v2  ;;  %v2044_v5 = vld [vmem:[#allocation2 + $0x7c] ss:$12 sps:$4 sm:$0xff]   ;;  %s367_s18 = scalar_select %p366_p6, %s2290_s17, 1  ;;  %v2208_v20 = vmov 0.0  }
  0x2c   : > { %552 = vmatprep.subr.bf16.mxu0 %v2041_v3  ;;  %v2047_v7 = vld [vmem:[#allocation2 + $0x64] ss:$12 sps:$4 sm:$0xff]   ;;  %v2049_v8 = vld [vmem:[#allocation2 + $0x60] ss:$12 sps:$4 sm:$0xff]   ;;  %v2052_v10 = vld [vmem:[#allocation2 + $0x48] ss:$12 sps:$4 sm:$0xff]   ;;  %1756 = vmatprep.subr.bf16.mxu1 %v2208_v20 }
  0x2d   : > { %s1598_s20 = sshll.u32 %s367_s18, 3  ;;  %v2050_v9 = vld [vmem:[#allocation2 + $0x4c] ss:$12 sps:$4 sm:$0xff]   ;;  %v2053_v11 = vld [vmem:[#allocation2 + $0x34] ss:$12 sps:$4 sm:$0xff]   ;;  %s2772_s0 = sld [smem:[#allocation8_spill]] }
  0x2e   : > { %v2055_v12 = vld [vmem:[#allocation2 + $0x30] ss:$12 sps:$4 sm:$0xff]   ;;  %v2058_v14 = vld [vmem:[#allocation2 + $0x18] ss:$12 sps:$4 sm:$0xff]   ;;  %v2061_v16 = vld [vmem:[#allocation2] ss:$12 sps:$4 sm:$0xff]  }
  0x2f   : > { %553 = vmatpush1.bf16.msra.mxu0 %v2043_v4  ;;  %v2056_v13 = vld [vmem:[#allocation2 + $0x1c] ss:$12 sps:$4 sm:$0xff]   ;;  %v2059_v15 = vld [vmem:[#allocation2 + $0x4] ss:$12 sps:$4 sm:$0xff]   ;;  %v2391_v27 = vshrl.u32 %v407_v26, 7  ;;  %s2773_s2 = sld [smem:[#allocation10_spill]] }
  0x30   : > { %554 = vmatprep.subr.bf16.mxu0 %v2044_v5  ;;  %v2350_v19 = vld [vmem:[%s2759_s5 + $0x38] sm:$0xff]   ;;  %v2358_v21 = vld [vmem:[%s2759_s5 + $0x30] sm:$0xff]   ;;  %v2365_v22 = vld [vmem:[%s2759_s5 + $0x28] sm:$0xff]   ;;  %vm2209_vm0 = vmmov 0   ;;  %s2211_s21 = smov 32   ;;  %s2212_s25 = smov 64  }
  0x31   : > { %v2372_v23 = vld [vmem:[%s2759_s5 + $0x20] sm:$0xff]   ;;  %v2379_v24 = vld [vmem:[%s2759_s5 + $0x18] sm:$0xff]   ;;  %v2386_v25 = vld [vmem:[%s2759_s5 + $0x10] sm:$0xff]   ;;  %v409_v29 = vsub.s32 0, %v2391_v27  ;;  %1772 = vmatprep.mubr.msk.bf16.mxu1 %vm2209_vm0, %v2208_v20  ;;  %v413_v39 = vsub.s32 1, %v2391_v27  ;;  %vm673_vm1 = vcmask 261120  }
  0x32   : > { %v2396_v28 = vld [vmem:[%s2759_s5 + $0x8] sm:$0xff]   ;;  %v2409_v31 = vld [vmem:[%s2759_s5] sm:$0xff]   ;;  %vm680_vm2 = vcmask 785408   ;;  %vm677_vm3 = vcmask 523264   ;;  %vm773_vm4 = vcmask 31744   ;;  %vm789_vm5 = vcmask 1041408  }
  0x33   : > { %555 = vmatpush1.bf16.msra.mxu0 %v2046_v6  ;;  %s369_s26 = scalar_lea.vmem %s2772_s0, %s1598_s20  ;;  %s2210_s20 = smov 96  }
  0x34   : > { %556 = vmatprep.subr.bf16.mxu0 %v2047_v7  ;;  %v2340_v17 = vld [vmem:[%s369_s26] sm:$0xff]  ;;  %v2070_v7 = vld [vmem:[#allocation2 + $0xb0] ss:$12 sps:$4 sm:$0xff]   ;;  %s1655_s30 = sshll.u32 %s2290_s17, 7  ;;  %s2213_s27 = smov [#allocation5]  }
  0x35   : > { %v2344_v18 = vpack.c.bf16 %v2340_v17, %v2340_v17  ;;  %v2404_v30 = vld [vmem:[%s2773_s2] sm:$0x7]  ;;  %1757 = vmatpush3.bf16.msra.mxu1 %v2070_v7  ;;  %s1518_s0 = scalar_lea.hbm %s2764_s10, %s1655_s30 }
  0x36   : > { %v410_v32 = vrot.slane %v2404_v30, %v409_v29  ;;  %v414_v40 = vrot.slane %v2404_v30, %v413_v39  ;;  %1758 = vmatprep.subr.bf16.mxu1 %v2208_v20 }
  0x37   : > { %557 = vmatpush1.bf16.msra.mxu0 %v2049_v8  ;;  %v2071_v8 = vld [vmem:[#allocation2 + $0x98] ss:$12 sps:$4 sm:$0xff]  }
  0x38   : > { %558 = vmatprep.subr.bf16.mxu0 %v2050_v9  ;;  %v2072_v9 = vld [vmem:[#allocation2 + $0x80] ss:$12 sps:$4 sm:$0xff]  }
  0x39   : > { %1759 = vmatpush3.bf16.msra.mxu1 %v2071_v8 }
  0x3a   : > { %1760 = vmatprep.subr.bf16.mxu1 %v2208_v20 }
  0x3b   : > { %559 = vmatpush1.bf16.msra.mxu0 %v2052_v10  ;;  %v2073_v10 = vld [vmem:[#allocation2 + $0x68] ss:$12 sps:$4 sm:$0xff]  }
  0x3c   : > { %560 = vmatprep.subr.bf16.mxu0 %v2053_v11  ;;  %v2074_v11 = vld [vmem:[#allocation2 + $0x50] ss:$12 sps:$4 sm:$0xff]  }
  0x3d   : > { %1761 = vmatpush3.bf16.msra.mxu1 %v2072_v9 }
  0x3e   : > { %1762 = vmatprep.subr.bf16.mxu1 %v2208_v20 }
  0x3f   : > { %561 = vmatpush1.bf16.msra.mxu0 %v2055_v12  ;;  %v2075_v12 = vld [vmem:[#allocation2 + $0x38] ss:$12 sps:$4 sm:$0xff]  }
  0x40   : > { %562 = vmatprep.subr.bf16.mxu0 %v2056_v13 }
  0x41   : > { %1763 = vmatpush3.bf16.msra.mxu1 %v2073_v10 }
  0x42   : > { %1764 = vmatprep.subr.bf16.mxu1 %v2208_v20 }
  0x43   : > { %563 = vmatpush1.bf16.msra.mxu0 %v2058_v14  ;;  %v2076_v14 = vld [vmem:[#allocation2 + $0x20] ss:$12 sps:$4 sm:$0xff]  }
  0x44   : > { %564 = vmatprep.subr.bf16.mxu0 %v2059_v15 }
  0x45   : > { %1765 = vmatpush3.bf16.msra.mxu1 %v2074_v11 }
  0x46   : > { %1766 = vmatprep.subr.bf16.mxu1 %v2208_v20 }
  0x47   : > { %565 = vmatpush1.bf16.msra.mxu0 %v2061_v16 }
  0x48   : > { %1776 = vmatprep.subr.bf16.mxu0 %v2208_v20 }
  0x49   : > { %1767 = vmatpush3.bf16.msra.mxu1 %v2075_v12 }
  0x4a   : > { %583 = vmatmul.mubr.bf16.vlgmr.msra.gmra.mxu0 %v2344_v18  ;;  %1768 = vmatprep.subr.bf16.mxu1 %v2208_v20 }
  0x4b   : > { %1777 = vmatpush3.bf16.msra.mxu0 %v2350_v19  ;;  %1792 = vmatprep.mubr.msk.bf16.mxu0 %vm2209_vm0, %v2208_v20 }
  0x4c   : > { %1778 = vmatprep.subr.bf16.mxu0 %v2208_v20 }
  0x4d   : > { %1769 = vmatpush3.bf16.msra.mxu1 %v2076_v14 }
  0x4e   : > { %1770 = vmatprep.subr.bf16.mxu1 %v2208_v20 }
  0x4f   : > { %1779 = vmatpush3.bf16.msra.mxu0 %v2358_v21 }
  0x50   : > { %1780 = vmatprep.subr.bf16.mxu0 %v2208_v20 }
  0x53   : > { %1781 = vmatpush3.bf16.msra.mxu0 %v2365_v22 }
  0x54   : > { %1782 = vmatprep.subr.bf16.mxu0 %v2208_v20 }
  0x57   : > { %1783 = vmatpush3.bf16.msra.mxu0 %v2372_v23 }
  0x58   : > { %1784 = vmatprep.subr.bf16.mxu0 %v2208_v20 }
  0x5b   : > { %1785 = vmatpush3.bf16.msra.mxu0 %v2379_v24 }
  0x5c   : > { %1786 = vmatprep.subr.bf16.mxu0 %v2208_v20 }
  0x5f   : > { %1787 = vmatpush3.bf16.msra.mxu0 %v2386_v25 }
  0x60   : > { %1788 = vmatprep.subr.bf16.mxu0 %v2208_v20 }
  0x63   : > { %1789 = vmatpush3.bf16.msra.mxu0 %v2396_v28 }
  0x64   : > { %1790 = vmatprep.subr.bf16.mxu0 %v2208_v20 }
  0x67   : > { %1791 = vmatpush3.bf16.msra.mxu0 %v2409_v31 }
  0x68   : > { %1822 = vmatprep.subr.bf16.mxu0 %v2208_v20 }
 0x10a   : > { %v584_v33 = vpop.f32.mrf.mxu0 }
 0x10b   : > { %v585_v34 = vadd.f32 %v584_v33, %v410_v32 }
 0x10c   : > { %v586_v35 = vpop.f32.mrf.mxu0 }
 0x10d   : > { %v665_v36 = vpack.c.bf16 %v585_v34, %v585_v34  ;;  %v587_v42 = vadd.f32 %v586_v35, %v414_v40  ;;  %v2077_v34 = vld [vmem:[#allocation2 + $0x8] ss:$12 sps:$4 sm:$0xff]  }
 0x10e   : > { %v588_v37 = vpop.f32.mrf.mxu0  ;;  %1771 = vmatpush3.bf16.msra.mxu1 %v2077_v34 }
 0x10f   : > { %671 = vrot.lane.b32.xlu1 %v665_v36, %s2210_s20  ;;  %667 = vrot.lane.b32.xlu0 %v665_v36, %s2211_s21  ;;  %v2424_v46 = vpack.c.bf16 %v587_v42, %v587_v42 }
 0x110   : > { %v589_v38 = vpop.f32.mrf.mxu0  ;;  %1796 = vmatprep.subr.bf16.mxu1 %v2208_v20 }
 0x111   : > { %1773 = vmatmul.mubr.bf16.vlgmr.msra.gmra.mxu1 %v2344_v18 }
 0x112   : > { %1798 = vmatprep.mubr.msk.bf16.mxu1 %vm2209_vm0, %v2208_v20 }
 0x113   : > { %669 = vrot.lane.b32.xlu0 %v665_v36, %s2212_s25 }
 0x181   : > { %v668_v41 = vpop.permute.xlu0 %667  ;;  %v672_v43 = vpop.permute.xlu1 %671 }
 0x182   : > { %v676_v44 = vsel %vm673_vm1, %v665_v36, %v668_v41  ;;  %v923_v58 = vsel %vm673_vm1, %v672_v43, %v665_v36 }
 0x183   : > { %v924_v59 = vsel %vm677_vm3, %v923_v58, %v668_v41  ;;  %v2553_v58 = vld [vmem:[%s2761_s7 + $0x28] sm:$0xff]  }
 0x185   : > { %v670_v45 = vpop.permute.xlu0 %669 }
 0x186   : > { %v679_v47 = vsel %vm677_vm3, %v676_v44, %v670_v45  ;;  %v1065_v48 = vsel %vm673_vm1, %v670_v45, %v672_v43  ;;  %v1207_v49 = vsel %vm673_vm1, %v668_v41, %v670_v45  ;;  %v925_v60 = vsel %vm680_vm2, %v924_v59, %v670_v45  ;;  %v2562_v59 = vld [vmem:[%s2761_s7 + $0x20] sm:$0xff]  }
 0x187   : > { %v682_v50 = vsel %vm680_vm2, %v679_v47, %v672_v43  ;;  %v1066_v51 = vsel %vm677_vm3, %v1065_v48, %v665_v36  ;;  %v1208_v52 = vsel %vm677_vm3, %v1207_v49, %v672_v43  ;;  %v927_v61 = vmul.bf16 %v925_v60, %v2424_v46  ;;  %v2571_v60 = vld [vmem:[%s2761_s7 + $0x18] sm:$0xff]  }
 0x188   : > { %v684_v53 = vmul.bf16 %v682_v50, %v2424_v46  ;;  %v1067_v54 = vsel %vm680_vm2, %v1066_v51, %v668_v41  ;;  %v1209_v55 = vsel %vm680_vm2, %v1208_v52, %v665_v36  ;;  %v648_v36 = vld [vmem:[%s2760_s6] sm:$0x3] }
 0x189   : > { %v1069_v56 = vmul.bf16 %v1067_v54, %v2424_v46  ;;  %v1211_v57 = vmul.bf16 %v1209_v55, %v2424_v46  ;;  %v2516_v37 = vsel %vm789_vm5, %v648_v36, 0 }
 0x18a   : > { %1793 = vmatmul.mubr.bf16.vlgmr.msra.gmra.mxu0 %v684_v53  ;;  %1797 = vmatpush3.bf16.msra.mxu1 %v2516_v37 }
 0x18b   : > { %1823 = vmatpush3.bf16.msra.mxu0 %v2350_v19  ;;  %1838 = vmatprep.mubr.msk.bf16.mxu0 %vm2209_vm0, %v2208_v20 }
 0x18c   : > { %1824 = vmatprep.subr.bf16.mxu0 %v2208_v20  ;;  %1802 = vmatprep.subr.bf16.mxu1 %v2208_v20 }
 0x18f   : > { %1825 = vmatpush3.bf16.msra.mxu0 %v2358_v21 }
 0x190   : > { %1826 = vmatprep.subr.bf16.mxu0 %v2208_v20 }
 0x193   : > { %1827 = vmatpush3.bf16.msra.mxu0 %v2365_v22 }
 0x194   : > { %1828 = vmatprep.subr.bf16.mxu0 %v2208_v20 }
 0x197   : > { %1829 = vmatpush3.bf16.msra.mxu0 %v2372_v23 }
 0x198   : > { %1830 = vmatprep.subr.bf16.mxu0 %v2208_v20 }
 0x19b   : > { %1831 = vmatpush3.bf16.msra.mxu0 %v2379_v24 }
 0x19c   : > { %1832 = vmatprep.subr.bf16.mxu0 %v2208_v20 }
 0x19f   : > { %1833 = vmatpush3.bf16.msra.mxu0 %v2386_v25 }
 0x1a0   : > { %1834 = vmatprep.subr.bf16.mxu0 %v2208_v20 }
 0x1a3   : > { %1835 = vmatpush3.bf16.msra.mxu0 %v2396_v28 }
 0x1a4   : > { %1836 = vmatprep.subr.bf16.mxu0 %v2208_v20 }
 0x1a7   : > { %1837 = vmatpush3.bf16.msra.mxu0 %v2409_v31 }
 0x1a8   : > { %1868 = vmatprep.subr.bf16.mxu0 %v2208_v20 }
 0x1aa   : > { %1839 = vmatmul.mubr.bf16.vlgmr.msra.gmra.mxu0 %v927_v61  ;;  %v2580_v61 = vld [vmem:[%s2761_s7 + $0x10] sm:$0xff]  }
 0x1ab   : > { %1869 = vmatpush3.bf16.msra.mxu0 %v2350_v19  ;;  %1884 = vmatprep.mubr.msk.bf16.mxu0 %vm2209_vm0, %v2208_v20 }
 0x1ac   : > { %1870 = vmatprep.subr.bf16.mxu0 %v2208_v20 }
 0x1af   : > { %1871 = vmatpush3.bf16.msra.mxu0 %v2358_v21 }
 0x1b0   : > { %1872 = vmatprep.subr.bf16.mxu0 %v2208_v20 }
 0x1b3   : > { %1873 = vmatpush3.bf16.msra.mxu0 %v2365_v22 }
 0x1b4   : > { %1874 = vmatprep.subr.bf16.mxu0 %v2208_v20 }
 0x1b7   : > { %1875 = vmatpush3.bf16.msra.mxu0 %v2372_v23 }
 0x1b8   : > { %1876 = vmatprep.subr.bf16.mxu0 %v2208_v20 }
 0x1bb   : > { %1877 = vmatpush3.bf16.msra.mxu0 %v2379_v24 }
 0x1bc   : > { %1878 = vmatprep.subr.bf16.mxu0 %v2208_v20 }
 0x1bf   : > { %1879 = vmatpush3.bf16.msra.mxu0 %v2386_v25 }
 0x1c0   : > { %1880 = vmatprep.subr.bf16.mxu0 %v2208_v20 }
 0x1c3   : > { %1881 = vmatpush3.bf16.msra.mxu0 %v2396_v28 }
 0x1c4   : > { %1882 = vmatprep.subr.bf16.mxu0 %v2208_v20 }
 0x1c7   : > { %1883 = vmatpush3.bf16.msra.mxu0 %v2409_v31 }
 0x1c8   : > { %1914 = vmatprep.subr.bf16.mxu0 %v2208_v20 }
 0x1ca   : > { %1885 = vmatmul.mubr.bf16.vlgmr.msra.gmra.mxu0 %v1069_v56  ;;  %v2538_v56 = vld [vmem:[%s2761_s7 + $0x38] sm:$0xff]  }
 0x1cb   : > { %1915 = vmatpush3.bf16.msra.mxu0 %v2350_v19  ;;  %1930 = vmatprep.mubr.msk.bf16.mxu0 %vm2209_vm0, %v2208_v20 }
 0x1cc   : > { %1916 = vmatprep.subr.bf16.mxu0 %v2208_v20 }
 0x1cf   : > { %1917 = vmatpush3.bf16.msra.mxu0 %v2358_v21 }
 0x1d0   : > { %1918 = vmatprep.subr.bf16.mxu0 %v2208_v20 }
 0x1d3   : > { %1919 = vmatpush3.bf16.msra.mxu0 %v2365_v22 }
 0x1d4   : > { %1920 = vmatprep.subr.bf16.mxu0 %v2208_v20 }
 0x1d7   : > { %1921 = vmatpush3.bf16.msra.mxu0 %v2372_v23 }
 0x1d8   : > { %1922 = vmatprep.subr.bf16.mxu0 %v2208_v20 }
 0x1db   : > { %1923 = vmatpush3.bf16.msra.mxu0 %v2379_v24 }
 0x1dc   : > { %1924 = vmatprep.subr.bf16.mxu0 %v2208_v20 }
 0x1df   : > { %1925 = vmatpush3.bf16.msra.mxu0 %v2386_v25 }
 0x1e0   : > { %1926 = vmatprep.subr.bf16.mxu0 %v2208_v20 }
 0x1e3   : > { %1927 = vmatpush3.bf16.msra.mxu0 %v2396_v28 }
 0x1e4   : > { %1928 = vmatprep.subr.bf16.mxu0 %v2208_v20 }
 0x1e7   : > { %1929 = vmatpush3.bf16.msra.mxu0 %v2409_v31 }
 0x1e8   : > { %1940 = vmatprep.subr.bf16.mxu0 %v2208_v20 }
 0x1ea   : > { %1931 = vmatmul.mubr.bf16.vlgmr.msra.gmra.mxu0 %v1211_v57  ;;  %v2544_v57 = vld [vmem:[%s2761_s7 + $0x30] sm:$0xff]  }
 0x1eb   : > { %1956 = vmatprep.mubr.msk.bf16.mxu0 %vm2209_vm0, %v2208_v20  ;;  %1941 = vmatpush3.bf16.msra.mxu0 %v2538_v56 }
 0x1ec   : > { %1942 = vmatprep.subr.bf16.mxu0 %v2208_v20 }
 0x1ef   : > { %1943 = vmatpush3.bf16.msra.mxu0 %v2544_v57 }
 0x1f0   : > { %1944 = vmatprep.subr.bf16.mxu0 %v2208_v20 }
 0x1f3   : > { %1945 = vmatpush3.bf16.msra.mxu0 %v2553_v58 }
 0x1f4   : > { %1946 = vmatprep.subr.bf16.mxu0 %v2208_v20 }
 0x1f7   : > { %1947 = vmatpush3.bf16.msra.mxu0 %v2562_v59 }
 0x1f8   : > { %1948 = vmatprep.subr.bf16.mxu0 %v2208_v20 }
 0x1fb   : > { %1949 = vmatpush3.bf16.msra.mxu0 %v2571_v60 }
 0x1fc   : > { %1950 = vmatprep.subr.bf16.mxu0 %v2208_v20 }
 0x1ff   : > { %1951 = vmatpush3.bf16.msra.mxu0 %v2580_v61 }
 0x200   : > { %1952 = vmatprep.subr.bf16.mxu0 %v2208_v20 }
 0x24a   : > { %v767_v62 = vpop.f32.mrf.mxu0 }
 0x24b   : > { %v774_v63 = vsel %vm773_vm4, %v767_v62, -inf }
 0x24c   : > { %775 = vmax.xlane.f32.xlu1 %v774_v63  ;;  %v1794_v0 = vpop.f32.mrf.mxu0  ;;  %v625_v63 = vpop.f32.mrf.mxu1 }
 0x24e   : > { %v770_v1 = vpop.f32.mrf.mxu0  ;;  %v1774_v0 = vpop.f32.mrf.mxu1 }
 0x24f   : > { %v2093_v0 = vld [vmem:[%s2757_s3] sm:$0xff]  }
 0x250   : > { %v1795_v2 = vpop.f32.mrf.mxu0  ;;  %v628_v1 = vpop.f32.mrf.mxu1 }
 0x252   : > { %v1775_v2 = vpop.f32.mrf.mxu1 }
 0x26a   : > { %v962_v3 = vpop.f32.mrf.mxu0 }
 0x26b   : > { %v968_v32 = vsel %vm773_vm4, %v962_v3, -inf }
 0x26c   : > { %v1840_v4 = vpop.f32.mrf.mxu0 }
 0x26e   : > { %v965_v5 = vpop.f32.mrf.mxu0 }
 0x26f   : > { %v417_v5 = vsub.s32 2, %v2391_v27 }
 0x270   : > { %v1841_v6 = vpop.f32.mrf.mxu0 }
 0x271   : > { %v418_v6 = vrot.slane %v2404_v30, %v417_v5 }
 0x273   : > { %v2608_v7 = vadd.f32 %v625_v63, %v418_v6  ;;  %v2092_v63 = vld [vmem:[%s2757_s3 + $0x8] sm:$0xff]  }
 0x28a   : > { %v1104_v13 = vpop.f32.mrf.mxu0 }
 0x28b   : > { %v1110_v33 = vsel %vm773_vm4, %v1104_v13, -inf }
 0x28c   : > { %v1886_v15 = vpop.f32.mrf.mxu0 }
 0x28e   : > { %v1107_v16 = vpop.f32.mrf.mxu0 }
 0x290   : > { %v1887_v19 = vpop.f32.mrf.mxu0 }
 0x2aa   : > { %v1246_v21 = vpop.f32.mrf.mxu0 }
 0x2ab   : > { %v1252_v35 = vsel %vm773_vm4, %v1246_v21, -inf }
 0x2ac   : > { %v1932_v22 = vpop.f32.mrf.mxu0 }
 0x2ae   : > { %v1249_v23 = vpop.f32.mrf.mxu0 }
 0x2b0   : > { %v1933_v24 = vpop.f32.mrf.mxu0 }
 0x2d5   : > { %v776_v25 = vpop.xlane.xlu1 %775 }
 0x2d6   : > { %v777_v26 = vsub.f32 %v767_v62, %v776_v25  ;;  %v2589_v62 = vld [vmem:[%s2761_s7 + $0x8] sm:$0xff]  }
 0x2d7   : > { %1953 = vmatpush3.bf16.msra.mxu0 %v2589_v62 }
 0x2d8   : > { %v778_v28 = vmul.f32 1.442695, %v777_v26  ;;  %1954 = vmatprep.subr.bf16.mxu0 %v2208_v20 }
 0x2da   : > { %2094 = vpow2.f32 %v778_v28 }
 0x2e7   : > { %v2095_v29 = vpop.eup %2094 }
 0x2e8   : > { %v780_v31 = vsel %vm773_vm4, %v2095_v29, 0.0 }
 0x2e9   : > { %781 = vadd.xlane.f32.xlu0 %v780_v31 }
 0x2ed   : > { %969 = vmax.xlane.f32.xlu0 %v968_v32 }
 0x2f1   : > { %1111 = vmax.xlane.f32.xlu0 %v1110_v33 }
 0x2f5   : > { %1253 = vmax.xlane.f32.xlu0 %v1252_v35 }
 0x372   : > { %v782_v38 = vpop.xlane.xlu0 %781 }
 0x373   : > { %2096 = vrcp.f32 %v782_v38 }
 0x376   : > { %v970_v39 = vpop.xlane.xlu0 %969 }
 0x377   : > { %v971_v40 = vsub.f32 %v962_v3, %v970_v39  ;;  %v2601_v3 = vld [vmem:[%s2761_s7] sm:$0xff]  }
 0x378   : > { %1955 = vmatpush3.bf16.msra.mxu0 %v2601_v3 }
 0x379   : > { %v972_v41 = vmul.f32 1.442695, %v971_v40 }
 0x37a   : > { %v1112_v18 = vpop.xlane.xlu0 %1111 }
 0x37b   : > { %2098 = vpow2.f32 %v972_v41  ;;  %v1113_v42 = vsub.f32 %v1104_v13, %v1112_v18 }
 0x37d   : > { %v1114_v43 = vmul.f32 1.442695, %v1113_v42 }
 0x37e   : > { %v1254_v44 = vpop.xlane.xlu0 %1253 }
 0x37f   : > { %2100 = vpow2.f32 %v1114_v43  ;;  %v1255_v45 = vsub.f32 %v1246_v21, %v1254_v44 }
 0x380   : > { %v2097_v46 = vpop.eup %2096 }
 0x381   : > { %v1256_v47 = vmul.f32 1.442695, %v1255_v45  ;;  %v784_v48 = vmul.f32 %v2097_v46, %v2095_v29 }
 0x383   : > { %2102 = vpow2.f32 %v1256_v47  ;;  %v785_v49 = vpack.c.bf16 %v784_v48, %v784_v48 }
 0x385   : > { %1799 = vmatmul.mubr.msk.bf16.vlgmr.msra.gmra.mxu1 %vm773_vm4, %v785_v49 }
 0x386   : > { %1818 = vmatprep.mubr.msk.bf16.mxu1 %vm2209_vm0, %v2208_v20  ;;  %1803 = vmatpush3.bf16.msra.mxu1 %v2538_v56 }
 0x387   : > { %1804 = vmatprep.subr.bf16.mxu1 %v2208_v20 }
 0x388   : > { %v2523_v50 = vpop.eup %2098 }
 0x389   : > { %v974_v51 = vsel %vm773_vm4, %v2523_v50, 0.0 }
 0x38a   : > { %975 = vadd.xlane.f32.xlu1 %v974_v51  ;;  %1805 = vmatpush3.bf16.msra.mxu1 %v2544_v57 }
 0x38b   : > { %1806 = vmatprep.subr.bf16.mxu1 %v2208_v20 }
 0x38c   : > { %v2527_v52 = vpop.eup %2100 }
 0x38d   : > { %v1116_v53 = vsel %vm773_vm4, %v2527_v52, 0.0 }
 0x38e   : > { %1117 = vadd.xlane.f32.xlu1 %v1116_v53  ;;  %1807 = vmatpush3.bf16.msra.mxu1 %v2553_v58 }
 0x38f   : > { %1808 = vmatprep.subr.bf16.mxu1 %v2208_v20 }
 0x390   : > { %v2531_v54 = vpop.eup %2102 }
 0x391   : > { %v1258_v55 = vsel %vm773_vm4, %v2531_v54, 0.0 }
 0x392   : > { %1259 = vadd.xlane.f32.xlu1 %v1258_v55  ;;  %1809 = vmatpush3.bf16.msra.mxu1 %v2562_v59 }
 0x393   : > { %1810 = vmatprep.subr.bf16.mxu1 %v2208_v20 }
 0x396   : > { %1811 = vmatpush3.bf16.msra.mxu1 %v2571_v60 }
 0x397   : > { %1812 = vmatprep.subr.bf16.mxu1 %v2208_v20 }
 0x39a   : > { %1813 = vmatpush3.bf16.msra.mxu1 %v2580_v61 }
 0x39b   : > { %1814 = vmatprep.subr.bf16.mxu1 %v2208_v20 }
 0x39e   : > { %1815 = vmatpush3.bf16.msra.mxu1 %v2589_v62 }
 0x39f   : > { %1816 = vmatprep.subr.bf16.mxu1 %v2208_v20 }
 0x3a2   : > { %1817 = vmatpush3.bf16.msra.mxu1 %v2601_v3 }
 0x3a3   : > { %1842 = vmatprep.subr.bf16.mxu1 %v2208_v20 }
 0x413   : > { %v976_v4 = vpop.xlane.xlu1 %975 }
 0x414   : > { %2104 = vrcp.f32 %v976_v4 }
 0x417   : > { %v1118_v15 = vpop.xlane.xlu1 %1117 }
 0x418   : > { %2106 = vrcp.f32 %v1118_v15 }
 0x41b   : > { %v1260_v34 = vpop.xlane.xlu1 %1259 }
 0x41c   : > { %2108 = vrcp.f32 %v1260_v34 }
 0x421   : > { %v2105_v12 = vpop.eup %2104 }
 0x422   : > { %v978_v27 = vmul.f32 %v2105_v12, %v2523_v50 }
 0x424   : > { %v979_v30 = vpack.c.bf16 %v978_v27, %v978_v27 }
 0x425   : > { %v2107_v28 = vpop.eup %2106 }
 0x426   : > { %v1120_v32 = vmul.f32 %v2107_v28, %v2527_v52 }
 0x428   : > { %v1121_v33 = vpack.c.bf16 %v1120_v32, %v1120_v32 }
 0x429   : > { %v2109_v43 = vpop.eup %2108 }
 0x42a   : > { %v1262_v46 = vmul.f32 %v2109_v43, %v2531_v54 }
 0x42c   : > { %v1263_v47 = vpack.c.bf16 %v1262_v46, %v1262_v46 }
 0x445   : > { %v827_v8 = vpop.f32.mrf.mxu1 }
 0x446   : > { %v833_v9 = vmul.f32 %v827_v8, %v2608_v7 }
 0x447   : > { %v1800_v10 = vpop.f32.mrf.mxu1 }
 0x448   : > { %v834_v11 = vpack.c.bf16 %v833_v9, %v833_v9 }
 0x449   : > { %v830_v13 = vpop.f32.mrf.mxu1 }
 0x44a   : > { %1819 = vmatmul.mubr.bf16.vlgmr.msra.gmra.mxu1 %v834_v11  ;;  %v1643_v11 = vld [vmem:[%s2758_s4] ss:$0 sm:$0xff] }
 0x44b   : > { %1843 = vmatpush3.bf16.msra.mxu1 %v2516_v37  ;;  %v1801_v14 = vpop.f32.mrf.mxu1  ;;  %1844 = vmatprep.mubr.msk.bf16.mxu1 %vm2209_vm0, %v2208_v20 }
 0x44c   : > { %1848 = vmatprep.subr.bf16.mxu1 %v2208_v20 }
 0x452   : > { %1845 = vmatmul.mubr.msk.bf16.vlgmr.msra.gmra.mxu1 %vm773_vm4, %v979_v30 }
 0x453   : > { %1849 = vmatpush3.bf16.msra.mxu1 %v2538_v56  ;;  %1864 = vmatprep.mubr.msk.bf16.mxu1 %vm2209_vm0, %v2208_v20 }
 0x454   : > { %1850 = vmatprep.subr.bf16.mxu1 %v2208_v20 }
 0x457   : > { %1851 = vmatpush3.bf16.msra.mxu1 %v2544_v57 }
 0x458   : > { %1852 = vmatprep.subr.bf16.mxu1 %v2208_v20 }
 0x45b   : > { %1853 = vmatpush3.bf16.msra.mxu1 %v2553_v58 }
 0x45c   : > { %1854 = vmatprep.subr.bf16.mxu1 %v2208_v20 }
 0x45f   : > { %1855 = vmatpush3.bf16.msra.mxu1 %v2562_v59 }
 0x460   : > { %1856 = vmatprep.subr.bf16.mxu1 %v2208_v20 }
 0x463   : > { %1857 = vmatpush3.bf16.msra.mxu1 %v2571_v60 }
 0x464   : > { %1858 = vmatprep.subr.bf16.mxu1 %v2208_v20 }
 0x467   : > { %1859 = vmatpush3.bf16.msra.mxu1 %v2580_v61 }
 0x468   : > { %1860 = vmatprep.subr.bf16.mxu1 %v2208_v20 }
 0x46b   : > { %1861 = vmatpush3.bf16.msra.mxu1 %v2589_v62 }
 0x46c   : > { %1862 = vmatprep.subr.bf16.mxu1 %v2208_v20 }
 0x46f   : > { %1863 = vmatpush3.bf16.msra.mxu1 %v2601_v3 }
 0x470   : > { %1888 = vmatprep.subr.bf16.mxu1 %v2208_v20 }
 0x50a   : > { %v2635_v16 = vpop.f32.mrf.mxu1 }
 0x50c   : > { %v1820_v19 = vpop.f32.mrf.mxu1 }
 0x50e   : > { %v920_v21 = vpop.f32.mrf.mxu1 }
 0x510   : > { %v1821_v22 = vpop.f32.mrf.mxu1 }
 0x512   : > { %v1017_v23 = vpop.f32.mrf.mxu1 }
 0x513   : > { %v1023_v24 = vmul.f32 %v1017_v23, %v2608_v7 }
 0x514   : > { %v1846_v25 = vpop.f32.mrf.mxu1 }
 0x515   : > { %v1024_v26 = vpack.c.bf16 %v1023_v24, %v1023_v24 }
 0x516   : > { %v1020_v29 = vpop.f32.mrf.mxu1 }
 0x517   : > { %1865 = vmatmul.mubr.bf16.vlgmr.msra.gmra.mxu1 %v1024_v26  ;;  %v1653_v29 = vld [vmem:[%s2763_s9] ss:$0 sm:$0xff] }
 0x518   : > { %1889 = vmatpush3.bf16.msra.mxu1 %v2516_v37  ;;  %v1847_v31 = vpop.f32.mrf.mxu1  ;;  %1890 = vmatprep.mubr.msk.bf16.mxu1 %vm2209_vm0, %v2208_v20 }
 0x519   : > { %1894 = vmatprep.subr.bf16.mxu1 %v2208_v20 }
 0x51f   : > { %1891 = vmatmul.mubr.msk.bf16.vlgmr.msra.gmra.mxu1 %vm773_vm4, %v1121_v33 }
 0x520   : > { %1895 = vmatpush3.bf16.msra.mxu1 %v2538_v56  ;;  %1910 = vmatprep.mubr.msk.bf16.mxu1 %vm2209_vm0, %v2208_v20 }
 0x521   : > { %1896 = vmatprep.subr.bf16.mxu1 %v2208_v20 }
 0x524   : > { %1897 = vmatpush3.bf16.msra.mxu1 %v2544_v57  ;;  %v2086_v57 = vld [vmem:[%s2757_s3 + $0x38] sm:$0xff]  }
 0x525   : > { %1898 = vmatprep.subr.bf16.mxu1 %v2208_v20 }
 0x528   : > { %1899 = vmatpush3.bf16.msra.mxu1 %v2553_v58  ;;  %v2087_v58 = vld [vmem:[%s2757_s3 + $0x30] sm:$0xff]  }
 0x529   : > { %1900 = vmatprep.subr.bf16.mxu1 %v2208_v20 }
 0x52c   : > { %1901 = vmatpush3.bf16.msra.mxu1 %v2562_v59  ;;  %v2088_v59 = vld [vmem:[%s2757_s3 + $0x28] sm:$0xff]  }
 0x52d   : > { %1902 = vmatprep.subr.bf16.mxu1 %v2208_v20 }
 0x530   : > { %1903 = vmatpush3.bf16.msra.mxu1 %v2571_v60  ;;  %v2089_v60 = vld [vmem:[%s2757_s3 + $0x20] sm:$0xff]  }
 0x531   : > { %1904 = vmatprep.subr.bf16.mxu1 %v2208_v20 }
 0x534   : > { %1905 = vmatpush3.bf16.msra.mxu1 %v2580_v61  ;;  %v2090_v61 = vld [vmem:[%s2757_s3 + $0x18] sm:$0xff]  }
 0x535   : > { %1906 = vmatprep.subr.bf16.mxu1 %v2208_v20 }
 0x538   : > { %1907 = vmatpush3.bf16.msra.mxu1 %v2589_v62  ;;  %v2091_v62 = vld [vmem:[%s2757_s3 + $0x10] sm:$0xff]  }
 0x539   : > { %1908 = vmatprep.subr.bf16.mxu1 %v2208_v20 }
 0x53c   : > { %1909 = vmatpush3.bf16.msra.mxu1 %v2601_v3 }
 0x53d   : > { %1934 = vmatprep.subr.bf16.mxu1 %v2208_v20 }
 0x5d7   : > { %v1059_v35 = vpop.f32.mrf.mxu1 }
 0x5d8   : > { %1350 = vrot.lane.b32.xlu0 %v1059_v35, %s2211_s21  ;;  %s2142_s21 = sshll.u32 %s2213_s27, 4  ;;  %s2143_s21 = int_to_ptr.vmem [resolvable:$false] %s2142_s21 }
 0x5d9   : > { %v1866_v36 = vpop.f32.mrf.mxu1  ;;  %s2144_s17 = scalar_lea.vmem %s2143_s21, 256 }
 0x5db   : > { %v1062_v38 = vpop.f32.mrf.mxu1 }
 0x5dd   : > { %v1867_v39 = vpop.f32.mrf.mxu1 }
 0x5df   : > { %v1159_v40 = vpop.f32.mrf.mxu1 }
 0x5e0   : > { %v1165_v41 = vmul.f32 %v1159_v40, %v2608_v7 }
 0x5e1   : > { %v1892_v18 = vpop.f32.mrf.mxu1 }
 0x5e2   : > { %v1166_v42 = vpack.c.bf16 %v1165_v41, %v1165_v41 }
 0x5e3   : > { %v1162_v44 = vpop.f32.mrf.mxu1 }
 0x5e4   : > { %1911 = vmatmul.mubr.bf16.vlgmr.msra.gmra.mxu1 %v1166_v42 }
 0x5e5   : > { %1935 = vmatpush3.bf16.msra.mxu1 %v2516_v37  ;;  %v1893_v45 = vpop.f32.mrf.mxu1  ;;  %1936 = vmatprep.mubr.msk.bf16.mxu1 %vm2209_vm0, %v2208_v20 }
 0x5e6   : > { %1960 = vmatprep.subr.bf16.mxu1 %v2208_v20 }
 0x5ec   : > { %1937 = vmatmul.mubr.msk.bf16.vlgmr.msra.gmra.mxu1 %vm773_vm4, %v1263_v47 }
 0x5ed   : > { %1976 = vmatprep.mubr.msk.bf16.mxu1 %vm2209_vm0, %v2208_v20  ;;  %1961 = vmatpush3.bf16.msra.mxu1 %v2086_v57 }
 0x5ee   : > { %1962 = vmatprep.subr.bf16.mxu1 %v2208_v20 }
 0x5f1   : > { %1963 = vmatpush3.bf16.msra.mxu1 %v2087_v58 }
 0x5f2   : > { %1964 = vmatprep.subr.bf16.mxu1 %v2208_v20 }
 0x5f5   : > { %1965 = vmatpush3.bf16.msra.mxu1 %v2088_v59 }
 0x5f6   : > { %1966 = vmatprep.subr.bf16.mxu1 %v2208_v20 }
 0x5f9   : > { %1967 = vmatpush3.bf16.msra.mxu1 %v2089_v60 }
 0x5fa   : > { %1968 = vmatprep.subr.bf16.mxu1 %v2208_v20 }
 0x5fd   : > { %1969 = vmatpush3.bf16.msra.mxu1 %v2090_v61 }
 0x5fe   : > { %1970 = vmatprep.subr.bf16.mxu1 %v2208_v20 }
 0x601   : > { %1971 = vmatpush3.bf16.msra.mxu1 %v2091_v62 }
 0x602   : > { %1972 = vmatprep.subr.bf16.mxu1 %v2208_v20 }
 0x605   : > { %1973 = vmatpush3.bf16.msra.mxu1 %v2092_v63 }
 0x606   : > { %1974 = vmatprep.subr.bf16.mxu1 %v2208_v20 }
 0x609   : > { %1975 = vmatpush3.bf16.msra.mxu1 %v2093_v0 }
 0x64a   : > { %v1351_v5 = vpop.permute.xlu0 %1350 }
 0x6a4   : > { %v1201_v48 = vpop.f32.mrf.mxu1 }
 0x6a5   : > { %1354 = vrot.lane.b32.xlu1 %v1201_v48, %s2212_s25 }
 0x6a6   : > { %v1912_v49 = vpop.f32.mrf.mxu1 }
 0x6a8   : > { %v1204_v50 = vpop.f32.mrf.mxu1 }
 0x6aa   : > { %v1913_v37 = vpop.f32.mrf.mxu1 }
 0x6ac   : > { %v1301_v51 = vpop.f32.mrf.mxu1 }
 0x6ad   : > { %v1307_v52 = vmul.f32 %v1301_v51, %v2608_v7  ;;  %v1361_v7 = vsel %vm673_vm1, %v2635_v16, %v1351_v5 }
 0x6ae   : > { %v1938_v53 = vpop.f32.mrf.mxu1 }
 0x6af   : > { %v1308_v55 = vpack.c.bf16 %v1307_v52, %v1307_v52 }
 0x6b0   : > { %v1304_v54 = vpop.f32.mrf.mxu1 }
 0x6b1   : > { %1957 = vmatmul.mubr.bf16.vlgmr.msra.gmra.mxu0 %v1308_v55 }
 0x6b2   : > { %v1939_v56 = vpop.f32.mrf.mxu1 }
 0x717   : > { %v1355_v6 = vpop.permute.xlu1 %1354 }
 0x718   : > { %v1362_v8 = vsel %vm677_vm3, %v1361_v7, %v1355_v6 }
 0x771   : > { %v1343_v1 = vpop.f32.mrf.mxu0 }
 0x772   : > { %1358 = vrot.lane.b32.xlu1 %v1343_v1, %s2210_s20  ;;  %s363_s20 = sand.u32 1, %s2194_s14  }
 0x773   : > { %v1958_v2 = vpop.f32.mrf.mxu0  ;;  %s1597_s26 = sshll.u32 %s363_s20, 3  ;;  %s1507_s1 = scalar_lea.sflag [#allocation4], %s363_s20 }
 0x774   : > { %s365_s25 = scalar_lea.vmem [#allocation5], %s1597_s26 }
 0x775   : > { %v1346_v3 = vpop.f32.mrf.mxu0  ;;  %s1520_s11 = sshll.u32 %s365_s25, 4  ;;  %s1521_s11 = int_to_ptr.vmem [resolvable:$true] %s1520_s11 }
 0x776   : > { %s2138_s2 = scalar_lea.vmem %s1521_s11, 128  ;;  %p2145_p11 = scmp.lt.s32.totalorder %s1521_s11, %s2143_s21 }
 0x777   : > { %v1959_v4 = vpop.f32.mrf.mxu0  ;;  %p2139_p8 = scmp.ne.s32.totalorder %s1521_s11, %s2138_s2  ;;  %p2146_p12 = scmp.lt.s32.totalorder %s2144_s17, %s2138_s2 }
 0x779   : > { %p2140_p9 = pnand %p2139_p8, %p2307_p5  ;;  %p2147_p13 = por %p2146_p12, %p2145_p11 }
 0x77b   : > { %p2141_p10 = pneg %p2140_p9 }
 0x77d   : > { %p2148_p0 = pnand %p2147_p13, %p2141_p10 }
 0x7e4   : > { %v1359_v9 = vpop.permute.xlu1 %1358 }
 0x7e5   : > { %v1363_v20 = vsel %vm680_vm2, %v1362_v8, %v1359_v9 }
 0x7e6   : > { %v1364_v10 = vpack.c.bf16 %v1363_v20, %v1363_v20 }
 0x7e8   : > { %1977 = vmatmul.mubr.bf16.vlgmr.msra.gmra.mxu1 %v1364_v10 }
 0x8a8   : > { %v1470_v12 = vpop.f32.mrf.mxu1 }
 0x8a9   : > { %v1471_v13 = vadd.f32 %v1643_v11, %v1470_v12 }
 0x8aa   : > { %v1978_v14 = vpop.f32.mrf.mxu1 }
 0x8ab   : > { %v1476_v27 = vadd.f32 %v1471_v13, %v2340_v17  ;;  %v1652_v17 = vld [vmem:[%s2762_s8] ss:$0 sm:$0xff] }
 0x8ac   : > { %v1473_v30 = vpop.f32.mrf.mxu1 }
 0x8ad   : > { %1477 = vadd.xlane.f32.xlu0 %v1476_v27 }
 0x8ae   : > { %v1979_v15 = vpop.f32.mrf.mxu1 }
 0x936   : > { %v1478_v16 = vpop.xlane.xlu0 %1477 }
 0x937   : > { %v1480_v19 = vmul.f32 0.0078125, %v1478_v16 }
 0x939   : > { %v1481_v21 = vsub.f32 %v1476_v27, %v1480_v19 }
 0x93b   : > { %v1482_v22 = vmul.f32 %v1481_v21, %v1481_v21 }
 0x93d   : > { %1483 = vadd.xlane.f32.xlu1 %v1482_v22 }
 0x9c6   : > { %v1484_v23 = vpop.xlane.xlu1 %1483 }
 0x9c7   : > { %v1485_v24 = vmul.f32 0.0078125, %v1484_v23 }
 0x9c9   : > { %v1486_v25 = vadd.f32 1e-12, %v1485_v24 }
 0x9cb   : > { %2110 = vrsqrt.f32 %v1486_v25 }
 0x9d8   : > { %v2111_v26 = vpop.eup %2110 }
 0x9d9   : > { %v1488_v28 = vmul.f32 %v2111_v26, %v1481_v21 }
 0x9db   : > { %v1496_v31 = vmul.f32 %v1652_v17, %v1488_v28 }
 0x9dd   : > { %v1504_v32 = vadd.f32 %v1653_v29, %v1496_v31 }
 0x9df   : > { %1505 = vst [vmem:[%s365_s25] sm:$0xff] %v1504_v32 }
 0x9e0   : > { %2151 = shalt.err (!%p2148_p0)
}
 0x9e1   : > { %s2152_s26 = scalar_lea.hbm %s1518_s0, 128  ;;  %s2156_s29 = scalar_lea.hbm %s2764_s10, 256 }
 0x9e2   : > { %p2153_p1 = scmp.ne.s32.totalorder %s1518_s0, %s2152_s26  ;;  %p2157_p4 = scmp.lt.s32.totalorder %s1518_s0, %s2764_s10 }
 0x9e3   : > { %p2158_p7 = scmp.lt.s32.totalorder %s2156_s29, %s2152_s26 }
 0x9e4   : > { %p2154_p2 = pnand %p2153_p1, %p2307_p5 }
 0x9e5   : > { %p2159_p6 = por %p2158_p7, %p2157_p4 }
 0x9e6   : > { %p2155_p3 = pneg %p2154_p2 }
 0x9e8   : > { %p2160_p8 = pnand %p2159_p6, %p2155_p3 }
 0x9ea   : > { %2163 = shalt.err (!%p2160_p8)
}
 0x9eb   : > { %1984 = dma.vmem_to_hbm [thread:$0]  (%p2307_p5), %s1521_s11, 128, %s1518_s0, %s1507_s1  }
 0x9ec PF: > { %p1996_p9 = scmp.ge.s32.totalorder %s2202_s16, 2  ;;  %s1532_s2 = sand.u32 1, %s2190_s13  }
 0x9ed   : > { %p2774_p10 = scmp.ne.s32.totalorder %s2769_s24, 0  ;;  %s1533_s12 = scalar_lea.sflag [#allocation4], %s1532_s2 }
 0x9ef   : > { %p1991_p11 = pnand %p1996_p9, %p2774_p10 }
 0x9f1   : > { %p1992_p12 = pneg %p1991_p11 }
 0x9f3   : > { %2185 = dma.done.wait (%p1992_p12), %s1533_s12, 128  }
 0x9f4   : > { %2187 = vsyncadd (%p1992_p12), %s1533_s12, 4294967168  ;;  %p21_p13 = scmp.ge.s32.totalorder %s2294_s19, 4   ;;  %s2775_s13 = smov %s2194_s14 }
 0x9f5   : > { %s2776_s14 = smov %s2198_s15  ;;  %s2777_s15 = smov %s2305_s22 }
 0x9f6   : > { %s2778_s16 = smov %s2294_s19  ;;  %23 = sbr.rel (!%p21_p13) target bundleno = 8 (0x8), region = 100 }
 0x9fb   :  { %1538 = vsyncpa [#allocation3], 1 }
 0x9fc   :  { %1540 = vsyncpa [#allocation3 + $0x1], 1 }
 0x9fd   :  { %1541 = vsyncpa [#allocation4], 1 }
 0x9fe   :  { %1543 = vsyncpa [#allocation4 + $0x1], 1 }

</bundles_post_ra>
